<compile_context>
chip_gen: v5e
topology: v5e:2x2
jax: 0.10.0
libtpu: 0.0.40
codegen_flags: <defaults>
</compile_context>

<pallas_src>
import functools

import numpy as np
import jax
import jax.numpy as jnp
from jax.experimental import pallas as pl
from jax.experimental.pallas import tpu as pltpu

# ---- hyper-parameters (small but shape-consistent with the module) ----
B = 2              # batch
N_NODES = 16       # num_nodes == new_nodes
T = 8              # num_timesteps_input
C_IN = 4           # in_channels
SPATIAL = 8        # spatial_channels (= per-head out_features of the GAT)
NHEADS = 4
D_HEAD = SPATIAL
F_ATT = SPATIAL * T        # GAT in_features = spatial_channels * num_timesteps_input
HD = NHEADS * D_HEAD       # concat GAT output width (must be divisible by T)
HN = NHEADS * N_NODES      # head-major lane width of the attention matrices
ALPHA = 0.2                # LeakyReLU negative slope
BN_EPS = 1e-5
TCO = T * SPATIAL          # flattened TimeBlock output width per node

_VMEM = pl.BlockSpec(memory_space=pltpu.MemorySpace.VMEM)


# =============================== fused kernel ===============================
def stgat_kernel(x_ref, adj_ref, se_ref, wconv_ref, bconv_ref, wproj_ref,
                 jmask_ref, bones_ref, kpre_ref, sumh_ref, kpost_ref,
                 colrep_ref, bmask_ref, rowrep_ref, hmask_ref,
                 gamma_ref, beta_ref, o_ref,
                 *, add_residual, mix_pre, mix_post):
    f32 = jnp.float32
    N = N_NODES

    x = x_ref[...]                                              # (B*N, T*C_in)

    # ---- 1. TimeBlock: banded-weight matmul == Conv2d kernel (1,3) over time.
    # wconv packs conv1|conv2|conv3 (weights + time band + zero padding) into one
    # (T*C_in, 3*T*Co) matrix: the whole gated temporal conv is one MXU push.
    conv = jnp.dot(x, wconv_ref[...], preferred_element_type=f32) + bconv_ref[...]
    c1 = conv[:, :TCO]
    c2 = conv[:, TCO:2 * TCO]
    c3 = conv[:, 2 * TCO:]
    feat = jnp.maximum(c1 + jax.nn.sigmoid(c2) + c3, 0.0)       # (B*N, T*Co)

    # ---- 2. spatial embedding (tiled once in the wrapper -> plain add) ------
    feat = feat + se_ref[...]                                   # (B*N, F_ATT)

    # ---- 3. fused GAT projection: [src-expanded | dst-expanded | Wh] --------
    # src-expanded[(b,i),(h,j)] = src-score(b,i,h)  (head expansion folded into
    # the weight), dst-expanded[(b,j),(h,*)] = dst-score(b,j,h).
    proj = jnp.dot(feat, wproj_ref[...], preferred_element_type=f32)  # (B*N, 2HN+HD)
    src_e = proj[:, :HN]                                        # (B*N, H*N)
    dst_e = proj[:, HN:2 * HN]                                  # (B*N, H*N)
    wh = proj[:, 2 * HN:]                                       # (B*N, H*D)

    # ---- 4. scores e[(b,i),(h,j)] = LeakyReLU(src(b,i,h) + dst(b,j,h)) ------
    # The "broadcast dst over i / select by lane j" step is one masked matmul:
    # kron(I_B, 1_{NxN}) @ (dst_e * Jmask) -- no runtime-built eye, no loops.
    dst_rows = jnp.dot(bones_ref[...], dst_e * jmask_ref[...],
                       preferred_element_type=f32)              # (B*N, H*N)
    e = src_e + dst_rows
    e = jnp.where(e > 0, e, ALPHA * e)                          # LeakyReLU

    # talking-heads pre-softmax mixing: ONE lane-side kron(p_pre, I_N) matmul
    # covering every batch (statically skipped if p_pre == I).
    if mix_pre:
        e = jnp.dot(e, kpre_ref[...], preferred_element_type=f32)

    # ---- 5. adjacency-masked softmax per (b, i, head) block of N lanes ------
    e = jnp.where(adj_ref[...] > 0.0, e, f32(-9e15))
    # Per-row max over all heads: softmax is shift-invariant within each head
    # block, so this equals the per-block max-subtracted softmax numerically.
    m = jnp.max(e, axis=1, keepdims=True)
    p = jnp.exp(e - m)
    denom = jnp.dot(p, sumh_ref[...], preferred_element_type=f32)  # per-head sums
    attn = p / denom                                            # exact softmax

    # ---- 6. post-softmax head mix (statically skipped when p_post == I) -----
    if mix_post:
        attn = jnp.dot(attn, kpost_ref[...], preferred_element_type=f32)

    # ---- 7. attention-weighted values: all B*H head matmuls fused into ONE --
    # (B*N, B*H*N) @ (B*H*N, H*D): batch-block-diagonal attention against a
    # head-block-diagonal Wh, both built with one small matmul + mask each.
    a_pack = (jnp.dot(attn, colrep_ref[...], preferred_element_type=f32)
              * bmask_ref[...])                                 # (B*N, B*H*N)
    wh_blk = (jnp.dot(rowrep_ref[...], wh, preferred_element_type=f32)
              * hmask_ref[...])                                 # (B*H*N, H*D)
    gat = jnp.dot(a_pack, wh_blk, preferred_element_type=f32)   # (B*N, H*D)

    # ELU (concat=True); exp is guarded so large positives never see exp(+x).
    gat = jnp.where(gat > 0, gat, jnp.exp(jnp.minimum(gat, 0.0)) - 1.0)

    # ---- 8. residual add: flat layouts line up exactly when HD//T == C_in ---
    y = gat + x if add_residual else gat                        # (B*N, HD)

    # ---- 9. BatchNorm2d(new_nodes), training-mode batch stats, + ReLU -------
    # Per-batch slices are written straight into o_ref (no concatenates).
    inv_cnt = f32(1.0 / (B * HD))
    row_sum = jnp.sum(y, axis=1, keepdims=True)                 # (B*N, 1)
    node_sum = row_sum[0:N, :]
    for b in range(1, B):
        node_sum = node_sum + row_sum[b * N:(b + 1) * N, :]
    mean = node_sum * inv_cnt                                   # (N, 1) per node
    var = None
    for b in range(B):
        d = y[b * N:(b + 1) * N, :] - mean
        s = jnp.sum(d * d, axis=1, keepdims=True)
        var = s if var is None else var + s
    var = var * inv_cnt                                         # biased (training BN)
    scale = gamma_ref[...] * jax.lax.rsqrt(var + BN_EPS)        # (N, 1)
    shift = beta_ref[...] - mean * scale
    for b in range(B):
        o_ref[b * N:(b + 1) * N, :] = jnp.maximum(
            y[b * N:(b + 1) * N, :] * scale + shift, 0.0)


# ====================== parameter preprocessing (wrapper) ======================
# These run in the jit wrapper on tiny parameter tensors; with params closed over
# (functools.partial) XLA constant-folds all of it at compile time.
def _fuse_time_conv_weights(W1, W2, W3, b1, b2, b3):
    """Banded fused conv weight (T*C_in, 3*T*Co) + tiled bias (1, 3*T*Co)."""
    K = 3
    t_in = jnp.arange(T)[:, None]
    t_out = jnp.arange(T)[None, :]
    k = t_in - t_out + 1                                        # (T, T) tap index
    valid = (k >= 0) & (k < K)                                  # zero 'same' padding
    kc = jnp.clip(k, 0, K - 1)

    def band(W):                                                # W: (Co, C_in, 3)
        Wt = jnp.transpose(W, (2, 1, 0))                        # (K, C_in, Co)
        Wsel = Wt[kc]                                           # (T, T, C_in, Co)
        Wsel = jnp.where(valid[:, :, None, None], Wsel, 0.0)
        # rows = (t_in, c_in), cols = (t_out, co)
        return jnp.transpose(Wsel, (0, 2, 1, 3)).reshape(T * C_IN, T * SPATIAL)

    wconv = jnp.concatenate([band(W1), band(W2), band(W3)], axis=1)
    bconv = jnp.concatenate([jnp.tile(b1, T), jnp.tile(b2, T), jnp.tile(b3, T)])
    return wconv, bconv.reshape(1, 3 * T * SPATIAL)


def _head_mat(a):
    """(H, D) -> (H*D, H) block-diagonal: column h = a[h] in head-h rows."""
    eye_h = jnp.eye(NHEADS, dtype=jnp.float32)
    return (a[:, :, None] * eye_h[:, None, :]).reshape(NHEADS * D_HEAD, NHEADS)


def _fuse_attention_projection(W_att, a_src, a_dst):
    """(F_ATT, 2*H*N + H*D): [src-expanded | dst-expanded | W_att].

    The per-head src/dst score columns are pre-expanded to H*N lanes via
    R = kron(I_H, 1_{1xN}) so the kernel gets them directly in the
    (b,i) x (head, j) lane layout with zero in-kernel data movement.
    """
    w_src = W_att @ _head_mat(a_src)                            # (F, H)
    w_dst = W_att @ _head_mat(a_dst)                            # (F, H)
    expand = jnp.kron(jnp.eye(NHEADS, dtype=jnp.float32),
                      jnp.ones((1, N_NODES), jnp.float32))      # (H, H*N)
    return jnp.concatenate([w_src @ expand, w_dst @ expand, W_att], axis=1)


def _build_structure_mats(p_pre, p_post):
    """All 0/1 / kron structure matrices (wrapper constants, constant-folded)."""
    eye_n = jnp.eye(N_NODES, dtype=jnp.float32)
    eye_h = jnp.eye(NHEADS, dtype=jnp.float32)
    eye_b = jnp.eye(B, dtype=jnp.float32)
    ones = lambda *s: jnp.ones(s, jnp.float32)
    jmask = jnp.tile(jnp.tile(eye_n, (1, NHEADS)), (B, 1))      # (BN, HN)  j==j'
    bones = jnp.kron(eye_b, ones(N_NODES, N_NODES))             # (BN, BN)  per-batch sum
    kpre = jnp.kron(p_pre, eye_n)                               # (HN, HN)  lane head-mix
    kpost = jnp.kron(p_post, eye_n)                             # (HN, HN)
    sumh = jnp.kron(eye_h, ones(N_NODES, N_NODES))              # (HN, HN)  per-head sum
    colrep = jnp.tile(jnp.eye(HN, dtype=jnp.float32), (1, B))   # (HN, B*HN)
    bmask = jnp.kron(eye_b, ones(N_NODES, HN))                  # (BN, B*HN) b==b'
    rowrep = jnp.kron(eye_b, jnp.kron(ones(NHEADS, 1), eye_n))  # (B*HN, BN)
    hmask = jnp.tile(jnp.kron(eye_h, ones(N_NODES, D_HEAD)), (B, 1))  # (B*HN, HD)
    return jmask, bones, kpre, sumh, kpost, colrep, bmask, rowrep, hmask


def _is_identity(p):
    """Static check on a (concrete, closed-over) mixing matrix."""
    try:
        p_np = np.asarray(p)
    except Exception:                       # traced -> keep the mixing matmul
        return False
    n = p_np.shape[0]
    return p_np.shape == (n, n) and bool(
        np.array_equal(p_np, np.eye(n, dtype=p_np.dtype)))


# ============================ full forward wrapper ============================
def stgat_block_forward(X, A_hat, SE, params):
    Bb, N, Tt, C = X.shape

    wconv, bconv = _fuse_time_conv_weights(params["W1"], params["W2"], params["W3"],
                                           params["b1"], params["b2"], params["b3"])
    wproj = _fuse_attention_projection(params["W_att"], params["a_src"],
                                       params["a_dst"])
    (jmask, bones, kpre, sumh, kpost, colrep, bmask, rowrep,
     hmask) = _build_structure_mats(params["p_pre"], params["p_post"])

    # Runtime inputs broadcast once in the wrapper (tiny), not in-kernel concats.
    adj_big = jnp.tile(A_hat, (Bb, NHEADS))                     # (B*N, H*N)
    se_big = jnp.tile(SE, (Bb, 1))                              # (B*N, F_ATT)
    x2d = X.reshape(Bb * N, Tt * C)                             # free, contiguous

    # Static specialization flags (params are compile-time constants here).
    add_residual = (HD // Tt) == C
    mix_pre = not _is_identity(params["p_pre"])
    mix_post = not _is_identity(params["p_post"])

    inputs = (x2d, adj_big, se_big, wconv, bconv, wproj, jmask, bones, kpre,
              sumh, kpost, colrep, bmask, rowrep, hmask,
              params["bn_gamma"], params["bn_beta"])

    out2d = pl.pallas_call(
        functools.partial(stgat_kernel, add_residual=add_residual,
                          mix_pre=mix_pre, mix_post=mix_post),
        out_shape=jax.ShapeDtypeStruct((Bb * N, HD), jnp.float32),
        in_specs=[_VMEM] * len(inputs),
        out_specs=_VMEM,
    )(*inputs)
    return out2d.reshape(Bb, N, Tt, HD // Tt)                   # free, contiguous


def make_params(key):
    ks = jax.random.split(key, 10)
    return {
        "W1": 0.3 * jax.random.normal(ks[0], (SPATIAL, C_IN, 3), jnp.float32),
        "W2": 0.3 * jax.random.normal(ks[1], (SPATIAL, C_IN, 3), jnp.float32),
        "W3": 0.3 * jax.random.normal(ks[2], (SPATIAL, C_IN, 3), jnp.float32),
        "b1": 0.1 * jax.random.normal(ks[3], (SPATIAL,), jnp.float32),
        "b2": 0.1 * jax.random.normal(ks[4], (SPATIAL,), jnp.float32),
        "b3": 0.1 * jax.random.normal(ks[5], (SPATIAL,), jnp.float32),
        "W_att": 0.2 * jax.random.normal(ks[6], (F_ATT, HD), jnp.float32),
        "a_src": 0.2 * jax.random.normal(ks[7], (NHEADS, D_HEAD), jnp.float32),
        "a_dst": 0.2 * jax.random.normal(ks[8], (NHEADS, D_HEAD), jnp.float32),
        # talking-heads mixing: identity + small deterministic perturbation
        "p_pre": jnp.eye(NHEADS, dtype=jnp.float32)
                 + 0.05 * jax.random.normal(ks[9], (NHEADS, NHEADS), jnp.float32),
        "p_post": jnp.eye(NHEADS, dtype=jnp.float32),   # identity -> matmul skipped
        # BatchNorm2d(new_nodes): weight filled with 1, bias filled with 0.1
        "bn_gamma": jnp.ones((N_NODES, 1), jnp.float32),
        "bn_beta": jnp.full((N_NODES, 1), 0.1, jnp.float32),
    }


if __name__ == "__main__":
    key = jax.random.PRNGKey(0)
    k_x, k_se, k_p = jax.random.split(key, 3)

    X = jax.random.normal(k_x, (B, N_NODES, T, C_IN), jnp.float32)
    # simple deterministic ring graph with self-loops
    eye = jnp.eye(N_NODES, dtype=jnp.float32)
    A_hat = eye + jnp.roll(eye, 1, axis=1) + jnp.roll(eye, -1, axis=1)
    SE = 0.1 * jax.random.normal(k_se, (N_NODES, F_ATT), jnp.float32)
    params = make_params(k_p)

    fwd = jax.jit(functools.partial(stgat_block_forward, params=params))
    y = fwd(X, A_hat, SE)
    y = jax.block_until_ready(y)

    assert y.shape == (B, N_NODES, T, HD // T), y.shape
    assert bool(jnp.all(jnp.isfinite(y)))
    assert bool(jnp.all(y >= 0.0))  # ReLU output
    print("KERNEL_OK")
</pallas_src>

<mosaic_0001>
module attributes {stable_mosaic.version = 11 : i64} {
  func.func @stgat_kernel(%arg0: memref<32x32xf32, #tpu.memory_space<vmem>>, %arg1: memref<32x64xf32, #tpu.memory_space<vmem>>, %arg2: memref<32x64xf32, #tpu.memory_space<vmem>>, %arg3: memref<32x192xf32, #tpu.memory_space<vmem>>, %arg4: memref<1x192xf32, #tpu.memory_space<vmem>>, %arg5: memref<64x160xf32, #tpu.memory_space<vmem>>, %arg6: memref<32x64xf32, #tpu.memory_space<vmem>>, %arg7: memref<32x32xf32, #tpu.memory_space<vmem>>, %arg8: memref<64x64xf32, #tpu.memory_space<vmem>>, %arg9: memref<64x64xf32, #tpu.memory_space<vmem>>, %arg10: memref<64x64xf32, #tpu.memory_space<vmem>>, %arg11: memref<64x128xf32, #tpu.memory_space<vmem>>, %arg12: memref<32x128xf32, #tpu.memory_space<vmem>>, %arg13: memref<128x32xf32, #tpu.memory_space<vmem>>, %arg14: memref<128x32xf32, #tpu.memory_space<vmem>>, %arg15: memref<16x1xf32, #tpu.memory_space<vmem>>, %arg16: memref<16x1xf32, #tpu.memory_space<vmem>>, %arg17: memref<32x32xf32, #tpu.memory_space<vmem>>) attributes {dimension_semantics = [], scalar_prefetch = 0 : i64, scratch_operands = 0 : i64, tpu.core_type = #tpu.core_type<tc>} {
    %c0 = arith.constant 0 : index
    %c0_0 = arith.constant 0 : index
    %0 = vector.load %arg0[%c0, %c0_0] : memref<32x32xf32, #tpu.memory_space<vmem>>, vector<32x32xf32>
    %c0_1 = arith.constant 0 : index
    %c0_2 = arith.constant 0 : index
    %1 = vector.load %arg3[%c0_1, %c0_2] : memref<32x192xf32, #tpu.memory_space<vmem>>, vector<32x192xf32>
    %cst = arith.constant dense<0.000000e+00> : vector<32x192xf32>
    %2 = tpu.matmul %0, %1, %cst {dimension_numbers = #tpu.dot_dimension_numbers<[1], [0], [0], [1], [0, 0, 1, 1], [], []>} : vector<32x32xf32>, vector<32x192xf32>, vector<32x192xf32> -> vector<32x192xf32>
    %c0_3 = arith.constant 0 : index
    %c0_4 = arith.constant 0 : index
    %3 = vector.load %arg4[%c0_3, %c0_4] : memref<1x192xf32, #tpu.memory_space<vmem>>, vector<1x192xf32>
    %4 = vector.broadcast %3 : vector<1x192xf32> to vector<32x192xf32>
    %5 = arith.addf %2, %4 : vector<32x192xf32>
    %6 = vector.extract_strided_slice %5 {offsets = [0, 0], sizes = [32, 64], strides = [1, 1]} : vector<32x192xf32> to vector<32x64xf32>
    %7 = vector.extract_strided_slice %5 {offsets = [0, 64], sizes = [32, 64], strides = [1, 1]} : vector<32x192xf32> to vector<32x64xf32>
    %8 = vector.extract_strided_slice %5 {offsets = [0, 128], sizes = [32, 64], strides = [1, 1]} : vector<32x192xf32> to vector<32x64xf32>
    %9 = arith.negf %7 : vector<32x64xf32>
    %10 = math.exp %9 : vector<32x64xf32>
    %cst_5 = arith.constant 1.000000e+00 : f32
    %11 = vector.broadcast %cst_5 : f32 to vector<32x64xf32>
    %12 = arith.addf %11, %10 : vector<32x64xf32>
    %13 = arith.divf %11, %12 : vector<32x64xf32>
    %14 = arith.addf %6, %13 : vector<32x64xf32>
    %15 = arith.addf %14, %8 : vector<32x64xf32>
    %cst_6 = arith.constant 0.000000e+00 : f32
    %16 = vector.broadcast %cst_6 : f32 to vector<32x64xf32>
    %17 = arith.maximumf %15, %16 : vector<32x64xf32>
    %c0_7 = arith.constant 0 : index
    %c0_8 = arith.constant 0 : index
    %18 = vector.load %arg2[%c0_7, %c0_8] : memref<32x64xf32, #tpu.memory_space<vmem>>, vector<32x64xf32>
    %19 = arith.addf %17, %18 : vector<32x64xf32>
    %c0_9 = arith.constant 0 : index
    %c0_10 = arith.constant 0 : index
    %20 = vector.load %arg5[%c0_9, %c0_10] : memref<64x160xf32, #tpu.memory_space<vmem>>, vector<64x160xf32>
    %cst_11 = arith.constant dense<0.000000e+00> : vector<32x160xf32>
    %21 = tpu.matmul %19, %20, %cst_11 {dimension_numbers = #tpu.dot_dimension_numbers<[1], [0], [0], [1], [0, 0, 1, 1], [], []>} : vector<32x64xf32>, vector<64x160xf32>, vector<32x160xf32> -> vector<32x160xf32>
    %22 = vector.extract_strided_slice %21 {offsets = [0, 0], sizes = [32, 64], strides = [1, 1]} : vector<32x160xf32> to vector<32x64xf32>
    %23 = vector.extract_strided_slice %21 {offsets = [0, 64], sizes = [32, 64], strides = [1, 1]} : vector<32x160xf32> to vector<32x64xf32>
    %24 = vector.extract_strided_slice %21 {offsets = [0, 128], sizes = [32, 32], strides = [1, 1]} : vector<32x160xf32> to vector<32x32xf32>
    %c0_12 = arith.constant 0 : index
    %c0_13 = arith.constant 0 : index
    %25 = vector.load %arg7[%c0_12, %c0_13] : memref<32x32xf32, #tpu.memory_space<vmem>>, vector<32x32xf32>
    %c0_14 = arith.constant 0 : index
    %c0_15 = arith.constant 0 : index
    %26 = vector.load %arg6[%c0_14, %c0_15] : memref<32x64xf32, #tpu.memory_space<vmem>>, vector<32x64xf32>
    %27 = arith.mulf %23, %26 : vector<32x64xf32>
    %cst_16 = arith.constant dense<0.000000e+00> : vector<32x64xf32>
    %28 = tpu.matmul %25, %27, %cst_16 {dimension_numbers = #tpu.dot_dimension_numbers<[1], [0], [0], [1], [0, 0, 1, 1], [], []>} : vector<32x32xf32>, vector<32x64xf32>, vector<32x64xf32> -> vector<32x64xf32>
    %29 = arith.addf %22, %28 : vector<32x64xf32>
    %cst_17 = arith.constant 0.000000e+00 : f32
    %30 = vector.broadcast %cst_17 : f32 to vector<32x64xf32>
    %31 = arith.cmpf ogt, %29, %30 : vector<32x64xf32>
    %cst_18 = arith.constant 2.000000e-01 : f32
    %32 = vector.broadcast %cst_18 : f32 to vector<32x64xf32>
    %33 = arith.mulf %32, %29 : vector<32x64xf32>
    %34 = arith.select %31, %29, %33 : vector<32x64xi1>, vector<32x64xf32>
    %c0_19 = arith.constant 0 : index
    %c0_20 = arith.constant 0 : index
    %35 = vector.load %arg8[%c0_19, %c0_20] : memref<64x64xf32, #tpu.memory_space<vmem>>, vector<64x64xf32>
    %cst_21 = arith.constant dense<0.000000e+00> : vector<32x64xf32>
    %36 = tpu.matmul %34, %35, %cst_21 {dimension_numbers = #tpu.dot_dimension_numbers<[1], [0], [0], [1], [0, 0, 1, 1], [], []>} : vector<32x64xf32>, vector<64x64xf32>, vector<32x64xf32> -> vector<32x64xf32>
    %c0_22 = arith.constant 0 : index
    %c0_23 = arith.constant 0 : index
    %37 = vector.load %arg1[%c0_22, %c0_23] : memref<32x64xf32, #tpu.memory_space<vmem>>, vector<32x64xf32>
    %cst_24 = arith.constant 0.000000e+00 : f32
    %38 = vector.broadcast %cst_24 : f32 to vector<32x64xf32>
    %39 = arith.cmpf ogt, %37, %38 : vector<32x64xf32>
    %cst_25 = arith.constant -9.000000e+15 : f32
    %40 = vector.broadcast %cst_25 : f32 to vector<32x64xf32>
    %41 = arith.select %39, %36, %40 : vector<32x64xi1>, vector<32x64xf32>
    %cst_26 = arith.constant dense<0xFF800000> : vector<32xf32>
    %42 = vector.multi_reduction <maximumf>, %41, %cst_26 [1] : vector<32x64xf32> to vector<32xf32>
    %43 = vector.shape_cast %42 : vector<32xf32> to vector<32x1xf32>
    %44 = vector.broadcast %43 : vector<32x1xf32> to vector<32x64xf32>
    %45 = arith.subf %41, %44 : vector<32x64xf32>
    %46 = math.exp %45 : vector<32x64xf32>
    %c0_27 = arith.constant 0 : index
    %c0_28 = arith.constant 0 : index
    %47 = vector.load %arg9[%c0_27, %c0_28] : memref<64x64xf32, #tpu.memory_space<vmem>>, vector<64x64xf32>
    %cst_29 = arith.constant dense<0.000000e+00> : vector<32x64xf32>
    %48 = tpu.matmul %46, %47, %cst_29 {dimension_numbers = #tpu.dot_dimension_numbers<[1], [0], [0], [1], [0, 0, 1, 1], [], []>} : vector<32x64xf32>, vector<64x64xf32>, vector<32x64xf32> -> vector<32x64xf32>
    %49 = arith.divf %46, %48 : vector<32x64xf32>
    %c0_30 = arith.constant 0 : index
    %c0_31 = arith.constant 0 : index
    %50 = vector.load %arg11[%c0_30, %c0_31] : memref<64x128xf32, #tpu.memory_space<vmem>>, vector<64x128xf32>
    %cst_32 = arith.constant dense<0.000000e+00> : vector<32x128xf32>
    %51 = tpu.matmul %49, %50, %cst_32 {dimension_numbers = #tpu.dot_dimension_numbers<[1], [0], [0], [1], [0, 0, 1, 1], [], []>} : vector<32x64xf32>, vector<64x128xf32>, vector<32x128xf32> -> vector<32x128xf32>
    %c0_33 = arith.constant 0 : index
    %c0_34 = arith.constant 0 : index
    %52 = vector.load %arg12[%c0_33, %c0_34] : memref<32x128xf32, #tpu.memory_space<vmem>>, vector<32x128xf32>
    %53 = arith.mulf %51, %52 : vector<32x128xf32>
    %c0_35 = arith.constant 0 : index
    %c0_36 = arith.constant 0 : index
    %54 = vector.load %arg13[%c0_35, %c0_36] : memref<128x32xf32, #tpu.memory_space<vmem>>, vector<128x32xf32>
    %cst_37 = arith.constant dense<0.000000e+00> : vector<128x32xf32>
    %55 = tpu.matmul %54, %24, %cst_37 {dimension_numbers = #tpu.dot_dimension_numbers<[1], [0], [0], [1], [0, 0, 1, 1], [], []>} : vector<128x32xf32>, vector<32x32xf32>, vector<128x32xf32> -> vector<128x32xf32>
    %c0_38 = arith.constant 0 : index
    %c0_39 = arith.constant 0 : index
    %56 = vector.load %arg14[%c0_38, %c0_39] : memref<128x32xf32, #tpu.memory_space<vmem>>, vector<128x32xf32>
    %57 = arith.mulf %55, %56 : vector<128x32xf32>
    %cst_40 = arith.constant dense<0.000000e+00> : vector<32x32xf32>
    %58 = tpu.matmul %53, %57, %cst_40 {dimension_numbers = #tpu.dot_dimension_numbers<[1], [0], [0], [1], [0, 0, 1, 1], [], []>} : vector<32x128xf32>, vector<128x32xf32>, vector<32x32xf32> -> vector<32x32xf32>
    %cst_41 = arith.constant 0.000000e+00 : f32
    %59 = vector.broadcast %cst_41 : f32 to vector<32x32xf32>
    %60 = arith.cmpf ogt, %58, %59 : vector<32x32xf32>
    %cst_42 = arith.constant 0.000000e+00 : f32
    %61 = vector.broadcast %cst_42 : f32 to vector<32x32xf32>
    %62 = arith.minimumf %58, %61 : vector<32x32xf32>
    %63 = math.exp %62 : vector<32x32xf32>
    %cst_43 = arith.constant 1.000000e+00 : f32
    %64 = vector.broadcast %cst_43 : f32 to vector<32x32xf32>
    %65 = arith.subf %63, %64 : vector<32x32xf32>
    %66 = arith.select %60, %58, %65 : vector<32x32xi1>, vector<32x32xf32>
    %67 = arith.addf %66, %0 : vector<32x32xf32>
    %cst_44 = arith.constant dense<0.000000e+00> : vector<32xf32>
    %68 = vector.multi_reduction <add>, %67, %cst_44 [1] : vector<32x32xf32> to vector<32xf32>
    %69 = vector.shape_cast %68 : vector<32xf32> to vector<32x1xf32>
    %70 = vector.extract_strided_slice %69 {offsets = [0, 0], sizes = [16, 1], strides = [1, 1]} : vector<32x1xf32> to vector<16x1xf32>
    %71 = vector.extract_strided_slice %69 {offsets = [16, 0], sizes = [16, 1], strides = [1, 1]} : vector<32x1xf32> to vector<16x1xf32>
    %72 = arith.addf %70, %71 : vector<16x1xf32>
    %cst_45 = arith.constant 1.562500e-02 : f32
    %73 = vector.broadcast %cst_45 : f32 to vector<16x1xf32>
    %74 = arith.mulf %72, %73 : vector<16x1xf32>
    %75 = vector.extract_strided_slice %67 {offsets = [0, 0], sizes = [16, 32], strides = [1, 1]} : vector<32x32xf32> to vector<16x32xf32>
    %76 = vector.broadcast %74 : vector<16x1xf32> to vector<16x32xf32>
    %77 = arith.subf %75, %76 : vector<16x32xf32>
    %78 = arith.mulf %77, %77 : vector<16x32xf32>
    %cst_46 = arith.constant dense<0.000000e+00> : vector<16xf32>
    %79 = vector.multi_reduction <add>, %78, %cst_46 [1] : vector<16x32xf32> to vector<16xf32>
    %80 = vector.shape_cast %79 : vector<16xf32> to vector<16x1xf32>
    %81 = vector.extract_strided_slice %67 {offsets = [16, 0], sizes = [16, 32], strides = [1, 1]} : vector<32x32xf32> to vector<16x32xf32>
    %82 = vector.broadcast %74 : vector<16x1xf32> to vector<16x32xf32>
    %83 = arith.subf %81, %82 : vector<16x32xf32>
    %84 = arith.mulf %83, %83 : vector<16x32xf32>
    %cst_47 = arith.constant dense<0.000000e+00> : vector<16xf32>
    %85 = vector.multi_reduction <add>, %84, %cst_47 [1] : vector<16x32xf32> to vector<16xf32>
    %86 = vector.shape_cast %85 : vector<16xf32> to vector<16x1xf32>
    %87 = arith.addf %80, %86 : vector<16x1xf32>
    %cst_48 = arith.constant 1.562500e-02 : f32
    %88 = vector.broadcast %cst_48 : f32 to vector<16x1xf32>
    %89 = arith.mulf %87, %88 : vector<16x1xf32>
    %c0_49 = arith.constant 0 : index
    %c0_50 = arith.constant 0 : index
    %90 = vector.load %arg15[%c0_49, %c0_50] : memref<16x1xf32, #tpu.memory_space<vmem>>, vector<16x1xf32>
    %cst_51 = arith.constant 9.99999974E-6 : f32
    %91 = vector.broadcast %cst_51 : f32 to vector<16x1xf32>
    %92 = arith.addf %89, %91 : vector<16x1xf32>
    %93 = math.rsqrt %92 : vector<16x1xf32>
    %94 = arith.mulf %90, %93 : vector<16x1xf32>
    %c0_52 = arith.constant 0 : index
    %c0_53 = arith.constant 0 : index
    %95 = vector.load %arg16[%c0_52, %c0_53] : memref<16x1xf32, #tpu.memory_space<vmem>>, vector<16x1xf32>
    %96 = arith.mulf %74, %94 : vector<16x1xf32>
    %97 = arith.subf %95, %96 : vector<16x1xf32>
    %98 = vector.extract_strided_slice %67 {offsets = [0, 0], sizes = [16, 32], strides = [1, 1]} : vector<32x32xf32> to vector<16x32xf32>
    %99 = vector.broadcast %94 : vector<16x1xf32> to vector<16x32xf32>
    %100 = arith.mulf %98, %99 : vector<16x32xf32>
    %101 = vector.broadcast %97 : vector<16x1xf32> to vector<16x32xf32>
    %102 = arith.addf %100, %101 : vector<16x32xf32>
    %cst_54 = arith.constant 0.000000e+00 : f32
    %103 = vector.broadcast %cst_54 : f32 to vector<16x32xf32>
    %104 = arith.maximumf %102, %103 : vector<16x32xf32>
    %c0_55 = arith.constant 0 : index
    %c0_56 = arith.constant 0 : index
    %105 = vector.load %arg17[%c0_55, %c0_56] : memref<32x32xf32, #tpu.memory_space<vmem>>, vector<16x32xf32>
    tpu.vector_store %arg17[%c0_55, %c0_56], %104 {strides = array<i32>} : memref<32x32xf32, #tpu.memory_space<vmem>>, vector<16x32xf32>,
    %106 = vector.extract_strided_slice %67 {offsets = [16, 0], sizes = [16, 32], strides = [1, 1]} : vector<32x32xf32> to vector<16x32xf32>
    %107 = vector.broadcast %94 : vector<16x1xf32> to vector<16x32xf32>
    %108 = arith.mulf %106, %107 : vector<16x32xf32>
    %109 = vector.broadcast %97 : vector<16x1xf32> to vector<16x32xf32>
    %110 = arith.addf %108, %109 : vector<16x32xf32>
    %cst_57 = arith.constant 0.000000e+00 : f32
    %111 = vector.broadcast %cst_57 : f32 to vector<16x32xf32>
    %112 = arith.maximumf %110, %111 : vector<16x32xf32>
    %c16 = arith.constant 16 : index
    %c0_58 = arith.constant 0 : index
    %113 = vector.load %arg17[%c16, %c0_58] : memref<32x32xf32, #tpu.memory_space<vmem>>, vector<16x32xf32>
    tpu.vector_store %arg17[%c16, %c0_58], %112 {strides = array<i32>} : memref<32x32xf32, #tpu.memory_space<vmem>>, vector<16x32xf32>,
    return
  }
}

</mosaic_0001>

<bundles_post_ra>
// kernel: tile.66
= control target key start
LH: loop header
LB: loop body
LE: loop exit
PB: predicated region body
PF: predicated region fallthrough
CT: control target
= control target key end

     0   :  { %vm260_vm0 = vcmask 1047556   ;;  %s492_s15 = smov 64   ;;  %vm262_vm1 = vcmask 523264   ;;  %vm335_vm2 = vcmask 1048064   ;;  %s783_s0 = inlined_call_operand.vmem [shape: f32[64,2,64], index: 0, kind: input, shape index: {}]   ;;  %s784_s1 = inlined_call_operand.vmem [shape: f32[64,128], index: 1, kind: output, shape index: {}]  }
   0x1   :  { %v470_v0 = vld [vmem:[%s783_s0 + $0xe] sm:$0x3]  ;;  %v471_v1 = vld [vmem:[%s783_s0 + $0xc] sm:$0x3]  ;;  %v472_v2 = vld [vmem:[%s783_s0 + $0xa] sm:$0x3] }
   0x2   :  { %231 = vst [vmem:[#allocation0 + $0x38] sm:$0x3] %v470_v0  ;;  %v473_v3 = vld [vmem:[%s783_s0 + $0x8] sm:$0x3]  ;;  %v474_v4 = vld [vmem:[%s783_s0 + $0x6] sm:$0x3] }
   0x3   :  { %235 = vst [vmem:[#allocation0 + $0x30] sm:$0x3] %v471_v1  ;;  %v475_v5 = vld [vmem:[%s783_s0 + $0x4] sm:$0x3]  ;;  %v476_v6 = vld [vmem:[%s783_s0 + $0x2] sm:$0x3] }
   0x4   :  { %239 = vst [vmem:[#allocation0 + $0x28] sm:$0x3] %v472_v2  ;;  %v256_v7 = vld [vmem:[%s783_s0] sm:$0x3]  ;;  %v462_v8 = vld [vmem:[%s783_s0 + $0x1e] sm:$0x3] }
   0x5   :  { %243 = vst [vmem:[#allocation0 + $0x20] sm:$0x3] %v473_v3  ;;  %v463_v9 = vld [vmem:[%s783_s0 + $0x1c] sm:$0x3]  ;;  %v464_v10 = vld [vmem:[%s783_s0 + $0x1a] sm:$0x3] }
   0x6   :  { %247 = vst [vmem:[#allocation0 + $0x18] sm:$0x3] %v474_v4  ;;  %v465_v11 = vld [vmem:[%s783_s0 + $0x18] sm:$0x3]  ;;  %v466_v12 = vld [vmem:[%s783_s0 + $0x16] sm:$0x3] }
   0x7   :  { %251 = vst [vmem:[#allocation0 + $0x10] sm:$0x3] %v475_v5  ;;  %v467_v13 = vld [vmem:[%s783_s0 + $0x14] sm:$0x3]  ;;  %v468_v14 = vld [vmem:[%s783_s0 + $0x12] sm:$0x3] }
   0x8   :  { %255 = vst [vmem:[#allocation0 + $0x8] sm:$0x3] %v476_v6  ;;  %v469_v15 = vld [vmem:[%s783_s0 + $0x10] sm:$0x3]  ;;  %v438_v17 = vld [vmem:[%s783_s0 + $0x4e] sm:$0x3] }
   0x9   :  { %257 = vst [vmem:[#allocation0] sm:$0x3] %v256_v7  ;;  %v439_v18 = vld [vmem:[%s783_s0 + $0x4c] sm:$0x3]  ;;  %v440_v21 = vld [vmem:[%s783_s0 + $0x4a] sm:$0x3] }
   0xa   :  { %199 = vst [vmem:[#allocation0 + $0x78] sm:$0x3] %v462_v8  ;;  %v441_v22 = vld [vmem:[%s783_s0 + $0x48] sm:$0x3]  ;;  %v442_v23 = vld [vmem:[%s783_s0 + $0x46] sm:$0x3] }
   0xb   :  { %203 = vst [vmem:[#allocation0 + $0x70] sm:$0x3] %v463_v9  ;;  %v443_v24 = vld [vmem:[%s783_s0 + $0x44] sm:$0x3]  ;;  %v444_v25 = vld [vmem:[%s783_s0 + $0x42] sm:$0x3] }
   0xc   :  { %207 = vst [vmem:[#allocation0 + $0x68] sm:$0x3] %v464_v10  ;;  %v330_v16 = vld [vmem:[#allocation0 + $0x1] ss:$8 sm:$0xf0]  }
   0xd   :  { %211 = vst [vmem:[#allocation0 + $0x60] sm:$0x3] %v465_v11  ;;  %v445_v26 = vld [vmem:[%s783_s0 + $0x40] sm:$0x3]  ;;  %v430_v28 = vld [vmem:[%s783_s0 + $0x5e] sm:$0x3] }
   0xe   :  { %215 = vst [vmem:[#allocation0 + $0x58] sm:$0x3] %v466_v12  ;;  %v431_v29 = vld [vmem:[%s783_s0 + $0x5c] sm:$0x3]  ;;  %v432_v32 = vld [vmem:[%s783_s0 + $0x5a] sm:$0x3] }
   0xf   :  { %219 = vst [vmem:[#allocation0 + $0x50] sm:$0x3] %v467_v13  ;;  %v433_v33 = vld [vmem:[%s783_s0 + $0x58] sm:$0x3]  ;;  %v434_v34 = vld [vmem:[%s783_s0 + $0x56] sm:$0x3] }
  0x10   :  { %v328_v19 = vld [vmem:[#allocation0 + $0x1] ss:$8 sm:$0xf]   ;;  %223 = vst [vmem:[#allocation0 + $0x48] sm:$0x3] %v468_v14 }
  0x11   :  { %v332_v20 = vsel %vm260_vm0, %v330_v16, %v328_v19  ;;  %227 = vst [vmem:[#allocation0 + $0x40] sm:$0x3] %v469_v15  ;;  %v435_v35 = vld [vmem:[%s783_s0 + $0x54] sm:$0x3]  ;;  %v436_v36 = vld [vmem:[%s783_s0 + $0x52] sm:$0x3] }
  0x12   :  { %333 = vrot.lane.b32.xlu0 %v332_v20, %s492_s15  ;;  %103 = vst [vmem:[#allocation0 + $0x138] sm:$0x3] %v438_v17  ;;  %v437_v37 = vld [vmem:[%s783_s0 + $0x50] sm:$0x3]  ;;  %v446_v39 = vld [vmem:[%s783_s0 + $0x3e] sm:$0x3] }
  0x13   :  { %107 = vst [vmem:[#allocation0 + $0x130] sm:$0x3] %v439_v18  ;;  %v447_v40 = vld [vmem:[%s783_s0 + $0x3c] sm:$0x3]  ;;  %v448_v43 = vld [vmem:[%s783_s0 + $0x3a] sm:$0x3] }
  0x14   :  { %111 = vst [vmem:[#allocation0 + $0x128] sm:$0x3] %v440_v21  ;;  %v351_v27 = vld [vmem:[#allocation0 + $0x41] ss:$8 sm:$0xf0]  }
  0x15   :  { %115 = vst [vmem:[#allocation0 + $0x120] sm:$0x3] %v441_v22  ;;  %v449_v44 = vld [vmem:[%s783_s0 + $0x38] sm:$0x3]  ;;  %v450_v45 = vld [vmem:[%s783_s0 + $0x36] sm:$0x3] }
  0x16   :  { %119 = vst [vmem:[#allocation0 + $0x118] sm:$0x3] %v442_v23  ;;  %v451_v46 = vld [vmem:[%s783_s0 + $0x34] sm:$0x3]  ;;  %v452_v47 = vld [vmem:[%s783_s0 + $0x32] sm:$0x3] }
  0x17   :  { %123 = vst [vmem:[#allocation0 + $0x110] sm:$0x3] %v443_v24  ;;  %v453_v48 = vld [vmem:[%s783_s0 + $0x30] sm:$0x3]  ;;  %v414_v50 = vld [vmem:[%s783_s0 + $0x7e] sm:$0x3] }
  0x18   :  { %v349_v30 = vld [vmem:[#allocation0 + $0x41] ss:$8 sm:$0xf]   ;;  %127 = vst [vmem:[#allocation0 + $0x108] sm:$0x3] %v444_v25 }
  0x19   :  { %v353_v31 = vsel %vm260_vm0, %v351_v27, %v349_v30  ;;  %131 = vst [vmem:[#allocation0 + $0x100] sm:$0x3] %v445_v26  ;;  %v415_v51 = vld [vmem:[%s783_s0 + $0x7c] sm:$0x3]  ;;  %v416_v54 = vld [vmem:[%s783_s0 + $0x7a] sm:$0x3] }
  0x1a   :  { %354 = vrot.lane.b32.xlu1 %v353_v31, %s492_s15  ;;  %71 = vst [vmem:[#allocation0 + $0x178] sm:$0x3] %v430_v28  ;;  %v417_v55 = vld [vmem:[%s783_s0 + $0x78] sm:$0x3]  ;;  %v418_v56 = vld [vmem:[%s783_s0 + $0x76] sm:$0x3] }
  0x1b   :  { %75 = vst [vmem:[#allocation0 + $0x170] sm:$0x3] %v431_v29  ;;  %v419_v57 = vld [vmem:[%s783_s0 + $0x74] sm:$0x3]  ;;  %v420_v58 = vld [vmem:[%s783_s0 + $0x72] sm:$0x3] }
  0x1c   :  { %79 = vst [vmem:[#allocation0 + $0x168] sm:$0x3] %v432_v32  ;;  %v340_v38 = vld [vmem:[#allocation0 + $0x101] ss:$8 sm:$0xf0]  }
  0x1d   :  { %83 = vst [vmem:[#allocation0 + $0x160] sm:$0x3] %v433_v33  ;;  %v421_v59 = vld [vmem:[%s783_s0 + $0x70] sm:$0x3]  ;;  %v454_v61 = vld [vmem:[%s783_s0 + $0x2e] sm:$0x3] }
  0x1e   :  { %87 = vst [vmem:[#allocation0 + $0x158] sm:$0x3] %v434_v34  ;;  %v455_v62 = vld [vmem:[%s783_s0 + $0x2c] sm:$0x3]  ;;  %v456_v1 = vld [vmem:[%s783_s0 + $0x2a] sm:$0x3] }
  0x1f   :  { %91 = vst [vmem:[#allocation0 + $0x150] sm:$0x3] %v435_v35  ;;  %v457_v2 = vld [vmem:[%s783_s0 + $0x28] sm:$0x3]  ;;  %v458_v3 = vld [vmem:[%s783_s0 + $0x26] sm:$0x3] }
  0x20   :  { %v338_v41 = vld [vmem:[#allocation0 + $0x101] ss:$8 sm:$0xf]   ;;  %95 = vst [vmem:[#allocation0 + $0x148] sm:$0x3] %v436_v36 }
  0x21   :  { %v342_v42 = vsel %vm260_vm0, %v340_v38, %v338_v41  ;;  %99 = vst [vmem:[#allocation0 + $0x140] sm:$0x3] %v437_v37  ;;  %v459_v4 = vld [vmem:[%s783_s0 + $0x24] sm:$0x3]  ;;  %v460_v5 = vld [vmem:[%s783_s0 + $0x22] sm:$0x3] }
  0x22   :  { %343 = vrot.lane.b32.xlu0 %v342_v42, %s492_s15  ;;  %135 = vst [vmem:[#allocation0 + $0xf8] sm:$0x3] %v446_v39  ;;  %v461_v6 = vld [vmem:[%s783_s0 + $0x20] sm:$0x3]  ;;  %v422_v8 = vld [vmem:[%s783_s0 + $0x6e] sm:$0x3] }
  0x23   :  { %139 = vst [vmem:[#allocation0 + $0xf0] sm:$0x3] %v447_v40  ;;  %v423_v9 = vld [vmem:[%s783_s0 + $0x6c] sm:$0x3]  ;;  %v424_v12 = vld [vmem:[%s783_s0 + $0x6a] sm:$0x3] }
  0x24   :  { %143 = vst [vmem:[#allocation0 + $0xe8] sm:$0x3] %v448_v43  ;;  %v362_v49 = vld [vmem:[#allocation0 + $0x141] ss:$8 sm:$0xf0]  }
  0x25   :  { %147 = vst [vmem:[#allocation0 + $0xe0] sm:$0x3] %v449_v44  ;;  %v425_v13 = vld [vmem:[%s783_s0 + $0x68] sm:$0x3]  ;;  %v426_v14 = vld [vmem:[%s783_s0 + $0x66] sm:$0x3] }
  0x26   :  { %151 = vst [vmem:[#allocation0 + $0xd8] sm:$0x3] %v450_v45  ;;  %v427_v15 = vld [vmem:[%s783_s0 + $0x64] sm:$0x3]  ;;  %v428_v16 = vld [vmem:[%s783_s0 + $0x62] sm:$0x3] }
  0x27   :  { %155 = vst [vmem:[#allocation0 + $0xd0] sm:$0x3] %v451_v46  ;;  %v429_v17 = vld [vmem:[%s783_s0 + $0x60] sm:$0x3] }
  0x28   :  { %v360_v52 = vld [vmem:[#allocation0 + $0x141] ss:$8 sm:$0xf]   ;;  %159 = vst [vmem:[#allocation0 + $0xc8] sm:$0x3] %v452_v47 }
  0x29   :  { %v364_v53 = vsel %vm260_vm0, %v362_v49, %v360_v52  ;;  %163 = vst [vmem:[#allocation0 + $0xc0] sm:$0x3] %v453_v48  ;;  %v258_v24 = vld [vmem:[#allocation0] ss:$8 sm:$0xf]  }
  0x2a   :  { %365 = vrot.lane.b32.xlu1 %v364_v53, %s492_s15  ;;  %7 = vst [vmem:[#allocation0 + $0x1f8] sm:$0x3] %v414_v50  ;;  %v259_v25 = vld [vmem:[#allocation0] ss:$8 sm:$0xf0]  }
  0x2b   :  { %11 = vst [vmem:[#allocation0 + $0x1f0] sm:$0x3] %v415_v51  ;;  %v261_v26 = vsel %vm260_vm0, %v259_v25, %v258_v24  ;;  %v265_v27 = vld [vmem:[#allocation0 + $0x40] ss:$8 sm:$0xf]  }
  0x2c   :  { %15 = vst [vmem:[#allocation0 + $0x1e8] sm:$0x3] %v416_v54  ;;  %v395_v60 = vld [vmem:[#allocation0 + $0xc1] ss:$8 sm:$0xf0]  }
  0x2d   :  { %19 = vst [vmem:[#allocation0 + $0x1e0] sm:$0x3] %v417_v55  ;;  %v267_v28 = vld [vmem:[#allocation0 + $0x40] ss:$8 sm:$0xf0]  }
  0x2e   :  { %23 = vst [vmem:[#allocation0 + $0x1d8] sm:$0x3] %v418_v56  ;;  %v269_v29 = vsel %vm260_vm0, %v267_v28, %v265_v27  ;;  %v292_v33 = vld [vmem:[#allocation0 + $0x100] ss:$8 sm:$0xf]  }
  0x2f   :  { %27 = vst [vmem:[#allocation0 + $0x1d0] sm:$0x3] %v419_v57  ;;  %v294_v34 = vld [vmem:[#allocation0 + $0x100] ss:$8 sm:$0xf0]  }
  0x30   :  { %v393_v63 = vld [vmem:[#allocation0 + $0xc1] ss:$8 sm:$0xf]   ;;  %31 = vst [vmem:[#allocation0 + $0x1c8] sm:$0x3] %v420_v58  ;;  %v296_v35 = vsel %vm260_vm0, %v294_v34, %v292_v33 }
  0x31   :  { %v397_v0 = vsel %vm260_vm0, %v395_v60, %v393_v63  ;;  %35 = vst [vmem:[#allocation0 + $0x1c0] sm:$0x3] %v421_v59  ;;  %v301_v36 = vld [vmem:[#allocation0 + $0x140] ss:$8 sm:$0xf]  }
  0x32   :  { %398 = vrot.lane.b32.xlu0 %v397_v0, %s492_s15  ;;  %167 = vst [vmem:[#allocation0 + $0xb8] sm:$0x3] %v454_v61  ;;  %v303_v37 = vld [vmem:[#allocation0 + $0x140] ss:$8 sm:$0xf0]  }
  0x33   :  { %171 = vst [vmem:[#allocation0 + $0xb0] sm:$0x3] %v455_v62  ;;  %v305_v38 = vsel %vm260_vm0, %v303_v37, %v301_v36  ;;  %v283_v39 = vld [vmem:[#allocation0 + $0xc0] ss:$8 sm:$0xf]  }
  0x34   :  { %175 = vst [vmem:[#allocation0 + $0xa8] sm:$0x3] %v456_v1  ;;  %v406_v7 = vld [vmem:[#allocation0 + $0x1c1] ss:$8 sm:$0xf0]  }
  0x35   :  { %179 = vst [vmem:[#allocation0 + $0xa0] sm:$0x3] %v457_v2  ;;  %v285_v40 = vld [vmem:[#allocation0 + $0xc0] ss:$8 sm:$0xf0]  }
  0x36   :  { %183 = vst [vmem:[#allocation0 + $0x98] sm:$0x3] %v458_v3  ;;  %v287_v41 = vsel %vm260_vm0, %v285_v40, %v283_v39  ;;  %v321_v47 = vld [vmem:[#allocation0 + $0x1c0] ss:$8 sm:$0xf0]  }
  0x37   :  { %187 = vst [vmem:[#allocation0 + $0x90] sm:$0x3] %v459_v4 }
  0x38   :  { %v404_v10 = vld [vmem:[#allocation0 + $0x1c1] ss:$8 sm:$0xf]   ;;  %191 = vst [vmem:[#allocation0 + $0x88] sm:$0x3] %v460_v5 }
  0x39   :  { %v408_v11 = vsel %vm260_vm0, %v406_v7, %v404_v10  ;;  %195 = vst [vmem:[#allocation0 + $0x80] sm:$0x3] %v461_v6  ;;  %v319_v46 = vld [vmem:[#allocation0 + $0x1c0] ss:$8 sm:$0xf]  }
  0x3a   :  { %409 = vrot.lane.b32.xlu1 %v408_v11, %s492_s15  ;;  %39 = vst [vmem:[#allocation0 + $0x1b8] sm:$0x3] %v422_v8  ;;  %v323_v48 = vsel %vm260_vm0, %v321_v47, %v319_v46 }
  0x3b   :  { %43 = vst [vmem:[#allocation0 + $0x1b0] sm:$0x3] %v423_v9 }
  0x3c   :  { %47 = vst [vmem:[#allocation0 + $0x1a8] sm:$0x3] %v424_v12  ;;  %v373_v18 = vld [vmem:[#allocation0 + $0x81] ss:$8 sm:$0xf0]  }
  0x3d   :  { %51 = vst [vmem:[#allocation0 + $0x1a0] sm:$0x3] %v425_v13  ;;  %v276_v31 = vld [vmem:[#allocation0 + $0x80] ss:$8 sm:$0xf0]  }
  0x3e   :  { %55 = vst [vmem:[#allocation0 + $0x198] sm:$0x3] %v426_v14 }
  0x3f   :  { %59 = vst [vmem:[#allocation0 + $0x190] sm:$0x3] %v427_v15 }
  0x40   :  { %v371_v19 = vld [vmem:[#allocation0 + $0x81] ss:$8 sm:$0xf]   ;;  %63 = vst [vmem:[#allocation0 + $0x188] sm:$0x3] %v428_v16 }
  0x41   :  { %v375_v20 = vsel %vm260_vm0, %v373_v18, %v371_v19  ;;  %67 = vst [vmem:[#allocation0 + $0x180] sm:$0x3] %v429_v17  ;;  %v274_v30 = vld [vmem:[#allocation0 + $0x80] ss:$8 sm:$0xf]  }
  0x42   :  { %376 = vrot.lane.b32.xlu2 %v375_v20, %s492_s15  ;;  %263 = vst.msk [vmem:[%s784_s1] sm:$0xff] %vm262_vm1, %v261_v26   ;;  %v278_v32 = vsel %vm260_vm0, %v276_v31, %v274_v30 }
  0x43   :  { %477 = vst.msk [vmem:[%s784_s1 + $0x8] sm:$0xff] %vm262_vm1, %v269_v29  }
  0x44   :  { %v384_v21 = vld [vmem:[#allocation0 + $0x181] ss:$8 sm:$0xf0]   ;;  %478 = vst.msk [vmem:[%s784_s1 + $0x10] sm:$0xff] %vm262_vm1, %v278_v32  }
  0x45   :  { %480 = vst.msk [vmem:[%s784_s1 + $0x20] sm:$0xff] %vm262_vm1, %v296_v35   ;;  %v312_v44 = vld [vmem:[#allocation0 + $0x180] ss:$8 sm:$0xf0]  }
  0x46   :  { %481 = vst.msk [vmem:[%s784_s1 + $0x28] sm:$0xff] %vm262_vm1, %v305_v38  }
  0x47   :  { %479 = vst.msk [vmem:[%s784_s1 + $0x18] sm:$0xff] %vm262_vm1, %v287_v41  }
  0x48   :  { %v382_v22 = vld [vmem:[#allocation0 + $0x181] ss:$8 sm:$0xf]   ;;  %v310_v43 = vld [vmem:[#allocation0 + $0x180] ss:$8 sm:$0xf]  }
  0x49   :  { %v386_v23 = vsel %vm260_vm0, %v384_v21, %v382_v22  ;;  %v314_v45 = vsel %vm260_vm0, %v312_v44, %v310_v43  ;;  %483 = vst.msk [vmem:[%s784_s1 + $0x38] sm:$0xff] %vm262_vm1, %v323_v48  }
  0x4a   :  { %387 = vrot.lane.b32.xlu2 %v386_v23, %s492_s15  ;;  %482 = vst.msk [vmem:[%s784_s1 + $0x30] sm:$0xff] %vm262_vm1, %v314_v45  }
  0x84   :  { %v334_v42 = vpop.permute.xlu0 %333  }
  0x85   :  { %336 = vst.msk [vmem:[%s784_s1] sm:$0xff] %vm335_vm2, %v334_v42  }
  0x8c   :  { %v355_v49 = vpop.permute.xlu1 %354  }
  0x8d   :  { %485 = vst.msk [vmem:[%s784_s1 + $0x8] sm:$0xff] %vm335_vm2, %v355_v49  }
  0x94   :  { %v344_v50 = vpop.permute.xlu0 %343  }
  0x95   :  { %484 = vst.msk [vmem:[%s784_s1 + $0x20] sm:$0xff] %vm335_vm2, %v344_v50  }
  0x9c   :  { %v377_v51 = vpop.permute.xlu2 %376   ;;  %v366_v52 = vpop.permute.xlu1 %365  }
  0x9d   :  { %487 = vst.msk [vmem:[%s784_s1 + $0x10] sm:$0xff] %vm335_vm2, %v377_v51  }
  0x9e   :  { %486 = vst.msk [vmem:[%s784_s1 + $0x28] sm:$0xff] %vm335_vm2, %v366_v52  }
  0xa4   :  { %v399_v53 = vpop.permute.xlu0 %398   ;;  %v388_v54 = vpop.permute.xlu2 %387  }
  0xa5   :  { %489 = vst.msk [vmem:[%s784_s1 + $0x18] sm:$0xff] %vm335_vm2, %v399_v53  }
  0xa6   :  { %488 = vst.msk [vmem:[%s784_s1 + $0x30] sm:$0xff] %vm335_vm2, %v388_v54  }
  0xac   :  { %v410_v55 = vpop.permute.xlu1 %409  }
  0xad   :  { %490 = vst.msk [vmem:[%s784_s1 + $0x38] sm:$0xff] %vm335_vm2, %v410_v55  }

// kernel: tile.75
= control target key start
LH: loop header
LB: loop body
LE: loop exit
PB: predicated region body
PF: predicated region fallthrough
CT: control target
= control target key end

     0   :  { %s312_s0 = inlined_call_operand.vmem [shape: f32[16,16], index: 0, kind: input, shape index: {}]   ;;  %s313_s1 = inlined_call_operand.vmem [shape: f32[2,16,4,16], index: 1, kind: output, shape index: {}]  }
   0x1   :  { %v4_v0 = vld [vmem:[%s312_s0] ss:$0 sm:$0xff]  ;;  %v113_v1 = vld [vmem:[%s312_s0 + $0x1] ss:$0 sm:$0xff]  ;;  %v116_v2 = vld [vmem:[%s312_s0 + $0x2] ss:$0 sm:$0xff] }
   0x2   :  { %5 = vst [vmem:[%s313_s1] sm:$0xf] %v4_v0  ;;  %v119_v3 = vld [vmem:[%s312_s0 + $0x3] ss:$0 sm:$0xff]  ;;  %v122_v4 = vld [vmem:[%s312_s0 + $0x4] ss:$0 sm:$0xff] }
   0x3   :  { %112 = vst [vmem:[%s313_s1 + $0x40] sm:$0xf] %v4_v0  ;;  %v125_v5 = vld [vmem:[%s312_s0 + $0x5] ss:$0 sm:$0xff]  ;;  %v128_v6 = vld [vmem:[%s312_s0 + $0x6] ss:$0 sm:$0xff] }
   0x4   :  { %114 = vst [vmem:[%s313_s1 + $0x4] sm:$0xf] %v113_v1  ;;  %v131_v7 = vld [vmem:[%s312_s0 + $0x7] ss:$0 sm:$0xff]  ;;  %v134_v8 = vld [vmem:[%s312_s0 + $0x8] ss:$0 sm:$0xff] }
   0x5   :  { %115 = vst [vmem:[%s313_s1 + $0x44] sm:$0xf] %v113_v1  ;;  %v137_v9 = vld [vmem:[%s312_s0 + $0x9] ss:$0 sm:$0xff]  ;;  %v140_v10 = vld [vmem:[%s312_s0 + $0xa] ss:$0 sm:$0xff] }
   0x6   :  { %117 = vst [vmem:[%s313_s1 + $0x8] sm:$0xf] %v116_v2  ;;  %v143_v11 = vld [vmem:[%s312_s0 + $0xb] ss:$0 sm:$0xff]  ;;  %v146_v12 = vld [vmem:[%s312_s0 + $0xc] ss:$0 sm:$0xff] }
   0x7   :  { %118 = vst [vmem:[%s313_s1 + $0x48] sm:$0xf] %v116_v2  ;;  %v149_v13 = vld [vmem:[%s312_s0 + $0xd] ss:$0 sm:$0xff]  ;;  %v152_v14 = vld [vmem:[%s312_s0 + $0xe] ss:$0 sm:$0xff] }
   0x8   :  { %120 = vst [vmem:[%s313_s1 + $0xc] sm:$0xf] %v119_v3  ;;  %v155_v15 = vld [vmem:[%s312_s0 + $0xf] ss:$0 sm:$0xff] }
   0x9   :  { %121 = vst [vmem:[%s313_s1 + $0x4c] sm:$0xf] %v119_v3 }
   0xa   :  { %123 = vst [vmem:[%s313_s1 + $0x10] sm:$0xf] %v122_v4 }
   0xb   :  { %124 = vst [vmem:[%s313_s1 + $0x50] sm:$0xf] %v122_v4 }
   0xc   :  { %126 = vst [vmem:[%s313_s1 + $0x14] sm:$0xf] %v125_v5 }
   0xd   :  { %127 = vst [vmem:[%s313_s1 + $0x54] sm:$0xf] %v125_v5 }
   0xe   :  { %129 = vst [vmem:[%s313_s1 + $0x18] sm:$0xf] %v128_v6 }
   0xf   :  { %130 = vst [vmem:[%s313_s1 + $0x58] sm:$0xf] %v128_v6 }
  0x10   :  { %132 = vst [vmem:[%s313_s1 + $0x1c] sm:$0xf] %v131_v7 }
  0x11   :  { %133 = vst [vmem:[%s313_s1 + $0x5c] sm:$0xf] %v131_v7 }
  0x12   :  { %135 = vst [vmem:[%s313_s1 + $0x20] sm:$0xf] %v134_v8 }
  0x13   :  { %136 = vst [vmem:[%s313_s1 + $0x60] sm:$0xf] %v134_v8 }
  0x14   :  { %138 = vst [vmem:[%s313_s1 + $0x24] sm:$0xf] %v137_v9 }
  0x15   :  { %139 = vst [vmem:[%s313_s1 + $0x64] sm:$0xf] %v137_v9 }
  0x16   :  { %141 = vst [vmem:[%s313_s1 + $0x28] sm:$0xf] %v140_v10 }
  0x17   :  { %142 = vst [vmem:[%s313_s1 + $0x68] sm:$0xf] %v140_v10 }
  0x18   :  { %144 = vst [vmem:[%s313_s1 + $0x2c] sm:$0xf] %v143_v11 }
  0x19   :  { %145 = vst [vmem:[%s313_s1 + $0x6c] sm:$0xf] %v143_v11 }
  0x1a   :  { %147 = vst [vmem:[%s313_s1 + $0x30] sm:$0xf] %v146_v12 }
  0x1b   :  { %148 = vst [vmem:[%s313_s1 + $0x70] sm:$0xf] %v146_v12 }
  0x1c   :  { %150 = vst [vmem:[%s313_s1 + $0x34] sm:$0xf] %v149_v13 }
  0x1d   :  { %151 = vst [vmem:[%s313_s1 + $0x74] sm:$0xf] %v149_v13 }
  0x1e   :  { %153 = vst [vmem:[%s313_s1 + $0x38] sm:$0xf] %v152_v14 }
  0x1f   :  { %154 = vst [vmem:[%s313_s1 + $0x78] sm:$0xf] %v152_v14 }
  0x20   :  { %156 = vst [vmem:[%s313_s1 + $0x3c] sm:$0xf] %v155_v15 }
  0x21   :  { %157 = vst [vmem:[%s313_s1 + $0x7c] sm:$0xf] %v155_v15 }

// kernel: tile.76
= control target key start
LH: loop header
LB: loop body
LE: loop exit
PB: predicated region body
PF: predicated region fallthrough
CT: control target
= control target key end

     0   :  { %vm132_vm0 = vcmask 1047556   ;;  %s338_s15 = smov 48   ;;  %s339_s30 = smov 32   ;;  %vm134_vm1 = vcmask 130048   ;;  %vm171_vm2 = vcmask 523648   ;;  %vm214_vm3 = vcmask 392448   ;;  %s535_s0 = inlined_call_operand.vmem [shape: f32[2,16,4,16], index: 0, kind: input, shape index: {}]   ;;  %s536_s1 = inlined_call_operand.vmem [shape: f32[32,64], index: 1, kind: output, shape index: {}]  }
   0x1   :  { %v316_v0 = vld [vmem:[%s535_s0 + $0x1c] sm:$0xf]  ;;  %v317_v1 = vld [vmem:[%s535_s0 + $0x18] sm:$0xf]  ;;  %v318_v2 = vld [vmem:[%s535_s0 + $0x14] sm:$0xf] }
   0x2   :  { %103 = vst [vmem:[#allocation0 + $0x38] sm:$0xf] %v316_v0  ;;  %v319_v3 = vld [vmem:[%s535_s0 + $0x10] sm:$0xf]  ;;  %v320_v4 = vld [vmem:[%s535_s0 + $0xc] sm:$0xf] }
   0x3   :  { %107 = vst [vmem:[#allocation0 + $0x30] sm:$0xf] %v317_v1  ;;  %v321_v5 = vld [vmem:[%s535_s0 + $0x8] sm:$0xf]  ;;  %v322_v6 = vld [vmem:[%s535_s0 + $0x4] sm:$0xf] }
   0x4   :  { %111 = vst [vmem:[#allocation0 + $0x28] sm:$0xf] %v318_v2  ;;  %v128_v7 = vld [vmem:[%s535_s0] sm:$0xf]  ;;  %v300_v8 = vld [vmem:[%s535_s0 + $0x5c] sm:$0xf] }
   0x5   :  { %115 = vst [vmem:[#allocation0 + $0x20] sm:$0xf] %v319_v3  ;;  %v301_v9 = vld [vmem:[%s535_s0 + $0x58] sm:$0xf]  ;;  %v302_v10 = vld [vmem:[%s535_s0 + $0x54] sm:$0xf] }
   0x6   :  { %119 = vst [vmem:[#allocation0 + $0x18] sm:$0xf] %v320_v4  ;;  %v303_v11 = vld [vmem:[%s535_s0 + $0x50] sm:$0xf]  ;;  %v304_v12 = vld [vmem:[%s535_s0 + $0x4c] sm:$0xf] }
   0x7   :  { %123 = vst [vmem:[#allocation0 + $0x10] sm:$0xf] %v321_v5  ;;  %v305_v13 = vld [vmem:[%s535_s0 + $0x48] sm:$0xf]  ;;  %v306_v14 = vld [vmem:[%s535_s0 + $0x44] sm:$0xf] }
   0x8   :  { %127 = vst [vmem:[#allocation0 + $0x8] sm:$0xf] %v322_v6  ;;  %v307_v15 = vld [vmem:[%s535_s0 + $0x40] sm:$0xf]  ;;  %v308_v17 = vld [vmem:[%s535_s0 + $0x3c] sm:$0xf] }
   0x9   :  { %129 = vst [vmem:[#allocation0] sm:$0xf] %v128_v7  ;;  %v309_v18 = vld [vmem:[%s535_s0 + $0x38] sm:$0xf]  ;;  %v310_v21 = vld [vmem:[%s535_s0 + $0x34] sm:$0xf] }
   0xa   :  { %39 = vst [vmem:[#allocation0 + $0xb8] sm:$0xf] %v300_v8  ;;  %v311_v22 = vld [vmem:[%s535_s0 + $0x30] sm:$0xf]  ;;  %v312_v23 = vld [vmem:[%s535_s0 + $0x2c] sm:$0xf] }
   0xb   :  { %43 = vst [vmem:[#allocation0 + $0xb0] sm:$0xf] %v301_v9  ;;  %v313_v24 = vld [vmem:[%s535_s0 + $0x28] sm:$0xf]  ;;  %v314_v25 = vld [vmem:[%s535_s0 + $0x24] sm:$0xf] }
   0xc   :  { %47 = vst [vmem:[#allocation0 + $0xa8] sm:$0xf] %v302_v10  ;;  %v166_v16 = vld [vmem:[#allocation0 + $0x3] ss:$8 sm:$0xf0]   ;;  %vm257_vm4 = vcmask 261248  }
   0xd   :  { %51 = vst [vmem:[#allocation0 + $0xa0] sm:$0xf] %v303_v11  ;;  %v315_v26 = vld [vmem:[%s535_s0 + $0x20] sm:$0xf]  ;;  %v292_v30 = vld [vmem:[%s535_s0 + $0x7c] sm:$0xf] }
   0xe   :  { %55 = vst [vmem:[#allocation0 + $0x98] sm:$0xf] %v304_v12  ;;  %v209_v29 = vld [vmem:[#allocation0 + $0x2] ss:$8 sm:$0xf0]  }
   0xf   :  { %59 = vst [vmem:[#allocation0 + $0x90] sm:$0xf] %v305_v13  ;;  %v293_v31 = vld [vmem:[%s535_s0 + $0x78] sm:$0xf]  ;;  %v294_v35 = vld [vmem:[%s535_s0 + $0x74] sm:$0xf] }
  0x10   :  { %v164_v19 = vld [vmem:[#allocation0 + $0x3] ss:$8 sm:$0xf]   ;;  %63 = vst [vmem:[#allocation0 + $0x88] sm:$0xf] %v306_v14 }
  0x11   :  { %v168_v20 = vsel %vm132_vm0, %v166_v16, %v164_v19  ;;  %67 = vst [vmem:[#allocation0 + $0x80] sm:$0xf] %v307_v15  ;;  %v207_v27 = vld [vmem:[#allocation0 + $0x2] ss:$8 sm:$0xf]  }
  0x12   :  { %169 = vrot.lane.b32.xlu0 %v168_v20, %s338_s15  ;;  %71 = vst [vmem:[#allocation0 + $0x78] sm:$0xf] %v308_v17  ;;  %v211_v32 = vsel %vm132_vm0, %v209_v29, %v207_v27  ;;  %v295_v36 = vld [vmem:[%s535_s0 + $0x70] sm:$0xf]  ;;  %v296_v37 = vld [vmem:[%s535_s0 + $0x6c] sm:$0xf] }
  0x13   :  { %75 = vst [vmem:[#allocation0 + $0x70] sm:$0xf] %v309_v18  ;;  %212 = vrot.lane.b32.xlu2 %v211_v32, %s339_s30  ;;  %v297_v38 = vld [vmem:[%s535_s0 + $0x68] sm:$0xf]  ;;  %v298_v39 = vld [vmem:[%s535_s0 + $0x64] sm:$0xf] }
  0x14   :  { %79 = vst [vmem:[#allocation0 + $0x68] sm:$0xf] %v310_v21  ;;  %v187_v28 = vld [vmem:[#allocation0 + $0x83] ss:$8 sm:$0xf0]  }
  0x15   :  { %83 = vst [vmem:[#allocation0 + $0x60] sm:$0xf] %v311_v22  ;;  %v299_v40 = vld [vmem:[%s535_s0 + $0x60] sm:$0xf]  ;;  %s340_s0 = smov 16  }
  0x16   :  { %87 = vst [vmem:[#allocation0 + $0x58] sm:$0xf] %v312_v23  ;;  %v230_v48 = vld [vmem:[#allocation0 + $0x82] ss:$8 sm:$0xf0]  }
  0x17   :  { %91 = vst [vmem:[#allocation0 + $0x50] sm:$0xf] %v313_v24  ;;  %v250_v49 = vld [vmem:[#allocation0 + $0x1] ss:$8 sm:$0xf]  }
  0x18   :  { %v185_v33 = vld [vmem:[#allocation0 + $0x83] ss:$8 sm:$0xf]   ;;  %95 = vst [vmem:[#allocation0 + $0x48] sm:$0xf] %v314_v25 }
  0x19   :  { %v189_v34 = vsel %vm132_vm0, %v187_v28, %v185_v33  ;;  %99 = vst [vmem:[#allocation0 + $0x40] sm:$0xf] %v315_v26  ;;  %v228_v47 = vld [vmem:[#allocation0 + $0x82] ss:$8 sm:$0xf]  }
  0x1a   :  { %190 = vrot.lane.b32.xlu1 %v189_v34, %s338_s15  ;;  %7 = vst [vmem:[#allocation0 + $0xf8] sm:$0xf] %v292_v30  ;;  %v252_v51 = vld [vmem:[#allocation0 + $0x1] ss:$8 sm:$0xf0]   ;;  %v232_v52 = vsel %vm132_vm0, %v230_v48, %v228_v47 }
  0x1b   :  { %11 = vst [vmem:[#allocation0 + $0xf0] sm:$0xf] %v293_v31  ;;  %v254_v55 = vsel %vm132_vm0, %v252_v51, %v250_v49  ;;  %v271_v1 = vld [vmem:[#allocation0 + $0x81] ss:$8 sm:$0xf]  }
  0x1c   :  { %15 = vst [vmem:[#allocation0 + $0xe8] sm:$0xf] %v294_v35  ;;  %v176_v41 = vld [vmem:[#allocation0 + $0x43] ss:$8 sm:$0xf0]  }
  0x1d   :  { %19 = vst [vmem:[#allocation0 + $0xe0] sm:$0xf] %v295_v36  ;;  %v219_v42 = vld [vmem:[#allocation0 + $0x42] ss:$8 sm:$0xf0]  }
  0x1e   :  { %23 = vst [vmem:[#allocation0 + $0xd8] sm:$0xf] %v296_v37  ;;  %v262_v57 = vld [vmem:[#allocation0 + $0x41] ss:$8 sm:$0xf0]  }
  0x1f   :  { %27 = vst [vmem:[#allocation0 + $0xd0] sm:$0xf] %v297_v38  ;;  %v273_v2 = vld [vmem:[#allocation0 + $0x81] ss:$8 sm:$0xf0]  }
  0x20   :  { %v174_v43 = vld [vmem:[#allocation0 + $0x43] ss:$8 sm:$0xf]   ;;  %31 = vst [vmem:[#allocation0 + $0xc8] sm:$0xf] %v298_v39  ;;  %v275_v3 = vsel %vm132_vm0, %v273_v2, %v271_v1 }
  0x21   :  { %v178_v44 = vsel %vm132_vm0, %v176_v41, %v174_v43  ;;  %35 = vst [vmem:[#allocation0 + $0xc0] sm:$0xf] %v299_v40  ;;  %v217_v45 = vld [vmem:[#allocation0 + $0x42] ss:$8 sm:$0xf]  }
  0x22   :  { %179 = vrot.lane.b32.xlu0 %v178_v44, %s338_s15  ;;  %v221_v46 = vsel %vm132_vm0, %v219_v42, %v217_v45  ;;  %v260_v56 = vld [vmem:[#allocation0 + $0x41] ss:$8 sm:$0xf]   ;;  %v130_v4 = vld [vmem:[#allocation0] ss:$8 sm:$0xf]  }
  0x23   :  { %222 = vrot.lane.b32.xlu2 %v221_v46, %s339_s30  ;;  %v264_v63 = vsel %vm132_vm0, %v262_v57, %v260_v56  ;;  %v131_v5 = vld [vmem:[#allocation0] ss:$8 sm:$0xf0]  }
  0x24   :  { %v198_v50 = vld [vmem:[#allocation0 + $0xc3] ss:$8 sm:$0xf0]   ;;  %v241_v59 = vld [vmem:[#allocation0 + $0xc2] ss:$8 sm:$0xf0]   ;;  %v133_v6 = vsel %vm132_vm0, %v131_v5, %v130_v4 }
  0x25   :  { %v284_v61 = vld [vmem:[#allocation0 + $0xc1] ss:$8 sm:$0xf0]   ;;  %135 = vst.msk [vmem:[%s536_s1] sm:$0xff] %vm134_vm1, %v133_v6  }
  0x26   :  { %v146_v7 = vld [vmem:[#allocation0 + $0x80] ss:$8 sm:$0xf]  }
  0x27   :  { %v148_v8 = vld [vmem:[#allocation0 + $0x80] ss:$8 sm:$0xf0]  }
  0x28   :  { %v196_v53 = vld [vmem:[#allocation0 + $0xc3] ss:$8 sm:$0xf]   ;;  %v239_v58 = vld [vmem:[#allocation0 + $0xc2] ss:$8 sm:$0xf]   ;;  %v150_v9 = vsel %vm132_vm0, %v148_v8, %v146_v7 }
  0x29   :  { %v200_v54 = vsel %vm132_vm0, %v198_v50, %v196_v53  ;;  %v282_v60 = vld [vmem:[#allocation0 + $0xc1] ss:$8 sm:$0xf]   ;;  %v243_v62 = vsel %vm132_vm0, %v241_v59, %v239_v58  ;;  %324 = vst.msk [vmem:[%s536_s1 + $0x10] sm:$0xff] %vm134_vm1, %v150_v9  }
  0x2a   :  { %201 = vrot.lane.b32.xlu1 %v200_v54, %s338_s15  ;;  %233 = vrot.lane.b32.xlu0 %v232_v52, %s339_s30  ;;  %v286_v0 = vsel %vm132_vm0, %v284_v61, %v282_v60  ;;  %v137_v11 = vld [vmem:[#allocation0 + $0x40] ss:$8 sm:$0xf]  }
  0x2b   :  { %255 = vrot.lane.b32.xlu2 %v254_v55, %s340_s0  ;;  %v139_v12 = vld [vmem:[#allocation0 + $0x40] ss:$8 sm:$0xf0]  }
  0x2c   :  { %v141_v13 = vsel %vm132_vm0, %v139_v12, %v137_v11  ;;  %v155_v14 = vld [vmem:[#allocation0 + $0xc0] ss:$8 sm:$0xf]  }
  0x2d   :  { %323 = vst.msk [vmem:[%s536_s1 + $0x8] sm:$0xff] %vm134_vm1, %v141_v13   ;;  %v157_v15 = vld [vmem:[#allocation0 + $0xc0] ss:$8 sm:$0xf0]  }
  0x2e   :  { %v159_v16 = vsel %vm132_vm0, %v157_v15, %v155_v14 }
  0x2f   :  { %325 = vst.msk [vmem:[%s536_s1 + $0x18] sm:$0xff] %vm134_vm1, %v159_v16  }
  0x32   :  { %244 = vrot.lane.b32.xlu1 %v243_v62, %s339_s30  ;;  %265 = vrot.lane.b32.xlu0 %v264_v63, %s340_s0 }
  0x33   :  { %287 = vrot.lane.b32.xlu2 %v286_v0, %s340_s0 }
  0x3a   :  { %276 = vrot.lane.b32.xlu1 %v275_v3, %s340_s0 }
  0x6d   :  { %v213_v10 = vpop.permute.xlu2 %212  }
  0x7d   :  { %v223_v17 = vpop.permute.xlu2 %222  }
  0x84   :  { %v170_v18 = vpop.permute.xlu0 %169  }
  0x85   :  { %172 = vst.msk [vmem:[%s536_s1] sm:$0xff] %vm171_vm2, %v170_v18   ;;  %v256_v19 = vpop.permute.xlu2 %255  }
  0x86   :  { %215 = vst.msk [vmem:[%s536_s1] sm:$0xff] %vm214_vm3, %v213_v10  }
  0x87   :  { %258 = vst.msk [vmem:[%s536_s1] sm:$0xff] %vm257_vm4, %v256_v19  }
  0x8c   :  { %v191_v20 = vpop.permute.xlu1 %190  }
  0x8d   :  { %327 = vst.msk [vmem:[%s536_s1 + $0x10] sm:$0xff] %vm171_vm2, %v191_v20   ;;  %v288_v21 = vpop.permute.xlu2 %287  }
  0x94   :  { %v180_v22 = vpop.permute.xlu0 %179  }
  0x95   :  { %326 = vst.msk [vmem:[%s536_s1 + $0x8] sm:$0xff] %vm171_vm2, %v180_v22  }
  0x96   :  { %329 = vst.msk [vmem:[%s536_s1 + $0x8] sm:$0xff] %vm214_vm3, %v223_v17  }
  0x9c   :  { %v202_v23 = vpop.permute.xlu1 %201   ;;  %v234_v24 = vpop.permute.xlu0 %233  }
  0x9d   :  { %328 = vst.msk [vmem:[%s536_s1 + $0x18] sm:$0xff] %vm171_vm2, %v202_v23  }
  0x9e   :  { %330 = vst.msk [vmem:[%s536_s1 + $0x10] sm:$0xff] %vm214_vm3, %v234_v24  }
  0xa4   :  { %v245_v25 = vpop.permute.xlu1 %244   ;;  %v266_v26 = vpop.permute.xlu0 %265  }
  0xa5   :  { %331 = vst.msk [vmem:[%s536_s1 + $0x18] sm:$0xff] %vm214_vm3, %v245_v25  }
  0xa6   :  { %332 = vst.msk [vmem:[%s536_s1 + $0x8] sm:$0xff] %vm257_vm4, %v266_v26  }
  0xa7   :  { %334 = vst.msk [vmem:[%s536_s1 + $0x18] sm:$0xff] %vm257_vm4, %v288_v21  }
  0xac   :  { %v277_v27 = vpop.permute.xlu1 %276  }
  0xad   :  { %333 = vst.msk [vmem:[%s536_s1 + $0x10] sm:$0xff] %vm257_vm4, %v277_v27  }

// kernel: tile.43
= control target key start
LH: loop header
LB: loop body
LE: loop exit
PB: predicated region body
PF: predicated region fallthrough
CT: control target
= control target key end

     0   :  { %s22_s0 = inlined_call_operand.vmem [shape: f32[8], index: 0, kind: input, shape index: {}]   ;;  %s23_s1 = inlined_call_operand.vmem [shape: f32[8,8], index: 1, kind: output, shape index: {}]  }
   0x1   :  { %v4_v0 = vld [vmem:[%s22_s0] ss:$0 sm:$0xff] }
   0x2   :  { %5 = vst [vmem:[%s23_s1] sm:$0xff] %v4_v0 }

// kernel: tile.44
= control target key start
LH: loop header
LB: loop body
LE: loop exit
PB: predicated region body
PF: predicated region fallthrough
CT: control target
= control target key end

     0   :  { %s67_s10 = smov 56   ;;  %s68_s11 = smov 40   ;;  %vm3_vm0 = vcmask 64512   ;;  %vm9_vm1 = vcmask 523712   ;;  %vm15_vm2 = vcmask 458112   ;;  %vm21_vm3 = vcmask 392512   ;;  %s111_s0 = inlined_call_operand.vmem [shape: f32[8,8], index: 0, kind: input, shape index: {}]   ;;  %s112_s1 = inlined_call_operand.vmem [shape: f32[64], index: 1, kind: output, shape index: {}]  }
   0x1   :  { %v53_v0 = vld [vmem:[%s111_s0 + $0x7] sm:$0x1]   ;;  %v55_v1 = vld [vmem:[%s111_s0 + $0x5] sm:$0x1]   ;;  %v57_v2 = vld [vmem:[%s111_s0 + $0x3] sm:$0x1]  }
   0x2   :  { %7 = vrot.lane.b32.xlu0 %v53_v0, %s67_s10  ;;  %19 = vrot.lane.b32.xlu1 %v55_v1, %s68_s11  ;;  %s69_s14 = smov 24   ;;  %v54_v3 = vld [vmem:[%s111_s0 + $0x6] sm:$0x1]   ;;  %v56_v4 = vld [vmem:[%s111_s0 + $0x4] sm:$0x1]   ;;  %s70_s21 = smov 48  }
   0x3   :  { %31 = vrot.lane.b32.xlu2 %v57_v2, %s69_s14  ;;  %v58_v5 = vld [vmem:[%s111_s0 + $0x2] sm:$0x1]   ;;  %s71_s22 = smov 32   ;;  %s72_s23 = smov 16   ;;  %v59_v6 = vld [vmem:[%s111_s0 + $0x1] sm:$0x1]  }
   0x4   :  { %s73_s26 = smov 8   ;;  %v2_v7 = vld [vmem:[%s111_s0] sm:$0x1]   ;;  %vm27_vm4 = vcmask 326912   ;;  %vm33_vm5 = vcmask 261312   ;;  %vm39_vm6 = vcmask 195712  }
   0x5   :  { %4 = vst.msk [vmem:[#allocation0] sm:$0x1] %vm3_vm0, %v2_v7   ;;  %vm45_vm7 = vcmask 130112  }
   0xa   :  { %13 = vrot.lane.b32.xlu0 %v54_v3, %s70_s21  ;;  %25 = vrot.lane.b32.xlu1 %v56_v4, %s71_s22 }
   0xb   :  { %37 = vrot.lane.b32.xlu2 %v58_v5, %s72_s23 }
  0x12   :  { %43 = vrot.lane.b32.xlu0 %v59_v6, %s73_s26 }
  0x5d   :  { %v32_v8 = vpop.permute.xlu2 %31  }
  0x65   :  { %v38_v9 = vpop.permute.xlu2 %37  }
  0x74   :  { %v8_v10 = vpop.permute.xlu0 %7   ;;  %v20_v11 = vpop.permute.xlu1 %19  }
  0x75   :  { %10 = vst.msk [vmem:[#allocation0] sm:$0x1] %vm9_vm1, %v8_v10  }
  0x7c   :  { %v14_v12 = vpop.permute.xlu0 %13   ;;  %v26_v13 = vpop.permute.xlu1 %25  }
  0x7d   :  { %16 = vst.msk [vmem:[#allocation0] sm:$0x1] %vm15_vm2, %v14_v12  }
  0x7e   :  { %22 = vst.msk [vmem:[#allocation0] sm:$0x1] %vm21_vm3, %v20_v11  }
  0x7f   :  { %28 = vst.msk [vmem:[#allocation0] sm:$0x1] %vm27_vm4, %v26_v13  }
  0x80   :  { %34 = vst.msk [vmem:[#allocation0] sm:$0x1] %vm33_vm5, %v32_v8  }
  0x81   :  { %40 = vst.msk [vmem:[#allocation0] sm:$0x1] %vm39_vm6, %v38_v9  }
  0x84   :  { %v44_v14 = vpop.permute.xlu0 %43  }
  0x85   :  { %46 = vst.msk [vmem:[#allocation0] sm:$0x1] %vm45_vm7, %v44_v14  }
  0x8c   :  { %v49_v15 = vld [vmem:[#allocation0] sm:$0x1] }
  0x8d   :  { %52 = vst [vmem:[%s112_s1] sm:$0x1] %v49_v15 }

// kernel: stgat_block_forward.1
= control target key start
LH: loop header
LB: loop body
LE: loop exit
PB: predicated region body
PF: predicated region fallthrough
CT: control target
= control target key end

     0   :  { %vm74_vm0 = vcmask 261120   ;;  %s1153_s19 = smov 64   ;;  %s1749_s3 = inlined_call_operand.vmem [shape: f32[32,192], index: 3, kind: input, shape index: {}]   ;;  %s1750_s10 = inlined_call_operand.vmem [shape: f32[64,64], index: 10, kind: input, shape index: {}]   ;;  %s1751_s0 = inlined_call_operand.vmem [shape: f32[32,32], index: 0, kind: input, shape index: {}]   ;;  %s1752_s4 = inlined_call_operand.vmem [shape: f32[1,192], index: 4, kind: input, shape index: {}]   ;;  %s1753_s5 = inlined_call_operand.vmem [shape: f32[64,160], index: 5, kind: input, shape index: {}]   ;;  %s1754_s6 = inlined_call_operand.vmem [shape: f32[32,64], index: 6, kind: input, shape index: {}]   ;;  %s1755_s2 = inlined_call_operand.vmem [shape: f32[32,64], index: 2, kind: input, shape index: {}]   ;;  %s1756_s9 = inlined_call_operand.vmem [shape: f32[64,64], index: 9, kind: input, shape index: {}]   ;;  %s1757_s11 = inlined_call_operand.vmem [shape: f32[64,128], index: 11, kind: input, shape index: {}]   ;;  %s1758_s8 = inlined_call_operand.vmem [shape: f32[64,64], index: 8, kind: input, shape index: {}]   ;;  %s1759_s7 = inlined_call_operand.vmem [shape: f32[32,32], index: 7, kind: input, shape index: {}]   ;;  %s1760_s1 = inlined_call_operand.vmem [shape: f32[32,64], index: 1, kind: input, shape index: {}]   ;;  %s1761_s13 = inlined_call_operand.vmem [shape: f32[128,32], index: 13, kind: input, shape index: {}]   ;;  %s1762_s14 = inlined_call_operand.vmem [shape: f32[128,32], index: 14, kind: input, shape index: {}]   ;;  %s1763_s12 = inlined_call_operand.vmem [shape: f32[32,128], index: 12, kind: input, shape index: {}]   ;;  %s1764_s15 = inlined_call_operand.vmem [shape: f32[16,1], index: 15, kind: input, shape index: {}]   ;;  %s1765_s16 = inlined_call_operand.vmem [shape: f32[16,1], index: 16, kind: input, shape index: {}]   ;;  %s1766_s17 = inlined_call_operand.vmem [shape: f32[32,32], index: 17, kind: output, shape index: {}]  }
   0x1   :  { %1768 = sst [smem:[#allocation2_spill]] %s1749_s3  ;;  %v56_v4 = vld [vmem:[%s1751_s0] sm:$0xff]  ;;  %v57_v5 = vld [vmem:[%s1751_s0 + $0x8] sm:$0xff]  ;;  %v58_v6 = vld [vmem:[%s1751_s0 + $0x10] sm:$0xff] }
   0x2   :  { %s1769_s26 = sld [smem:[#allocation2_spill]]  ;;  %v59_v7 = vld [vmem:[%s1751_s0 + $0x18] sm:$0xff]  ;;  %v1289_v12 = vld [vmem:[%s1752_s4] sm:$0x3]  ;;  %v271_v30 = vld [vmem:[%s1753_s5 + $0x70] sm:$0xff] }
   0x3   :  { %v70_v13 = vperm.slane %v1289_v12, 0  ;;  %v272_v31 = vld [vmem:[%s1753_s5 + $0x78] sm:$0xff]  ;;  %v269_v32 = vld [vmem:[%s1753_s5 + $0x60] sm:$0xff]  ;;  %294 = vmatpush.msra.mxu2 %v271_v30  ;;  %v270_v35 = vld [vmem:[%s1753_s5 + $0x68] sm:$0xff] }
   0x4   :  { %323 = vmatpush.msra.mxu3 %v272_v31  ;;  %v267_v39 = vld [vmem:[%s1753_s5 + $0x50] sm:$0xff]  ;;  %v268_v40 = vld [vmem:[%s1753_s5 + $0x58] sm:$0xff]  ;;  %v348_v31 = vld [vmem:[%s1754_s6] sm:$0xff] }
   0x5   :  { %295 = vmatpush.msra.mxu2 %v269_v32  ;;  %v71_v32 = vperm.slane %v1289_v12, 1  ;;  %v249_v12 = vld [vmem:[%s1755_s2] sm:$0xff] }
   0x6   :  { %324 = vmatpush.msra.mxu3 %v270_v35 }
   0x7   :  { %296 = vmatpush.msra.mxu2 %v267_v39  ;;  %v351_v39 = vld [vmem:[%s1754_s6 + $0x18] sm:$0xff] }
   0x8   :  { %v66_v0 = vld [vmem:[%s1769_s26 + $0x30] sm:$0xff]  ;;  %v64_v1 = vld [vmem:[%s1769_s26 + $0x20] sm:$0xff]  ;;  %v67_v8 = vld [vmem:[%s1769_s26 + $0x38] sm:$0xff]  ;;  %325 = vmatpush.msra.mxu3 %v268_v40  ;;  %362 = vrot.lane.b32.xlu2 %v351_v39, %s1153_s19 }
   0x9   :  { %99 = vmatpush.msra.mxu0 %v66_v0  ;;  %v62_v2 = vld [vmem:[%s1769_s26 + $0x10] sm:$0xff]  ;;  %v60_v3 = vld [vmem:[%s1769_s26] sm:$0xff]  ;;  %128 = vmatpush.msra.mxu1 %v67_v8  ;;  %v65_v9 = vld [vmem:[%s1769_s26 + $0x28] sm:$0xff] }
   0xa   :  { %v63_v10 = vld [vmem:[%s1769_s26 + $0x18] sm:$0xff]  ;;  %v61_v11 = vld [vmem:[%s1769_s26 + $0x8] sm:$0xff] }
   0xb   :  { %100 = vmatpush.msra.mxu0 %v64_v1  ;;  %129 = vmatpush.msra.mxu1 %v65_v9 }
   0xd   :  { %101 = vmatpush.msra.mxu0 %v62_v2  ;;  %130 = vmatpush.msra.mxu1 %v63_v10 }
   0xf   :  { %102 = vmatpush.msra.mxu0 %v60_v3  ;;  %131 = vmatpush.msra.mxu1 %v61_v11 }
  0x10   :  { %1026 = vmatmul.msk.f32.vlgmr.msra.gmra.mxu0 %vm74_vm0, %v56_v4  ;;  %1030 = vmatmul.msk.f32.vlgmr.msra.gmra.mxu1 %vm74_vm0, %v56_v4 }
  0x18   :  { %1027 = vmatmul.msk.f32.gmra.mxu0 %vm74_vm0, %v57_v5  ;;  %1031 = vmatmul.msk.f32.gmra.mxu1 %vm74_vm0, %v57_v5 }
  0x20   :  { %1028 = vmatmul.msk.f32.gmra.mxu0 %vm74_vm0, %v58_v6  ;;  %1032 = vmatmul.msk.f32.gmra.mxu1 %vm74_vm0, %v58_v6 }
  0x28   :  { %1029 = vmatmul.msk.f32.gmra.mxu0 %vm74_vm0, %v59_v7  ;;  %1033 = vmatmul.msk.f32.gmra.mxu1 %vm74_vm0, %v59_v7 }
  0x8d   :  { %v104_v14 = vpop.f32.mrf.mxu0  ;;  %v133_v30 = vpop.f32.mrf.mxu1 }
  0x8e   :  { %v1293_v15 = vadd.f32 %v104_v14, %v70_v13 }
  0x90   :  { %v1034_v16 = vmul.f32 -1.442695, %v1293_v15 }
  0x92   :  { %1105 = vpow2.f32 %v1034_v16 }
  0x95   :  { %v107_v17 = vpop.f32.mrf.mxu0  ;;  %v136_v35 = vpop.f32.mrf.mxu1 }
  0x96   :  { %v1297_v18 = vadd.f32 %v107_v17, %v70_v13 }
  0x98   :  { %v1106_v19 = vpop.eup %1105  ;;  %v1035_v20 = vmul.f32 -1.442695, %v1297_v18 }
  0x99   :  { %v157_v21 = vadd.f32 1.0, %v1106_v19  ;;  %v265_v19 = vld [vmem:[%s1753_s5 + $0x40] sm:$0xff] }
  0x9a   :  { %1107 = vpow2.f32 %v1035_v20  ;;  %v266_v20 = vld [vmem:[%s1753_s5 + $0x48] sm:$0xff]  ;;  %297 = vmatpush.msra.mxu2 %v265_v19 }
  0x9b   :  { %1109 = vrcp.f32 %v157_v21  ;;  %v172_v34 = vand.u32 2147483648, %v157_v21  ;;  %v170_v38 = vand.u32 2147483647, %v157_v21  ;;  %vm166_vm2 = vweird.f32 %v157_v21  ;;  %326 = vmatpush.msra.mxu3 %v266_v20 }
  0x9d   :  { %v110_v22 = vpop.f32.mrf.mxu0  ;;  %v173_v46 = vor.u32 1.1754944e-38, %v172_v34  ;;  %vm171_vm4 = vcmp.eq.f32.partialorder %v170_v38, 8.507059e+37  ;;  %v349_v38 = vld [vmem:[%s1754_s6 + $0x8] sm:$0xff] }
  0x9e   :  { %v1301_v23 = vadd.f32 %v110_v22, %v70_v13  ;;  %v264_v22 = vld [vmem:[%s1753_s5 + $0x38] sm:$0xff] }
  0x9f   :  { %327 = vmatpush.msra.mxu3 %v264_v22 }
  0xa0   :  { %v1108_v24 = vpop.eup %1107  ;;  %v1036_v25 = vmul.f32 -1.442695, %v1301_v23 }
  0xa1   :  { %v1110_v26 = vpop.eup %1109  ;;  %v158_v27 = vadd.f32 1.0, %v1108_v24  ;;  %v261_v24 = vld [vmem:[%s1753_s5 + $0x20] sm:$0xff] }
  0xa2   :  { %1111 = vpow2.f32 %v1036_v25  ;;  %v162_v28 = vmul.f32 %v1110_v26, %v157_v21  ;;  %vm167_vm1 = vweird.f32 %v1110_v26  ;;  %v263_v21 = vld [vmem:[%s1753_s5 + $0x30] sm:$0xff]  ;;  %v262_v25 = vld [vmem:[%s1753_s5 + $0x28] sm:$0xff] }
  0xa3   :  { %1113 = vrcp.f32 %v158_v27  ;;  %vm168_vm3 = vmor %vm166_vm2, %vm167_vm1  ;;  %v187_v51 = vand.u32 2147483648, %v158_v27  ;;  %v185_v53 = vand.u32 2147483647, %v158_v27  ;;  %vm181_vm6 = vweird.f32 %v158_v27  ;;  %298 = vmatpush.msra.mxu2 %v263_v21  ;;  %328 = vmatpush.msra.mxu3 %v262_v25 }
  0xa4   :  { %v163_v29 = vsub.f32 1.0, %v162_v28  ;;  %v257_v28 = vld [vmem:[%s1753_s5] sm:$0xff]  ;;  %vm273_vm2 = vcmask 523264  }
  0xa5   :  { %v113_v33 = vpop.f32.mrf.mxu0  ;;  %v188_v58 = vor.u32 1.1754944e-38, %v187_v51  ;;  %vm186_vm8 = vcmp.eq.f32.partialorder %v185_v53, 8.507059e+37  ;;  %299 = vmatpush.msra.mxu2 %v261_v24 }
  0xa6   :  { %v1316_v36 = vadd.f32 %v113_v33, %v70_v13  ;;  %v164_v37 = vmul.f32 %v1110_v26, %v163_v29  ;;  %v258_v29 = vld [vmem:[%s1753_s5 + $0x8] sm:$0xff]  ;;  %v134_v33 = vadd.f32 %v133_v30, %v71_v32 }
  0xa8   :  { %v1112_v41 = vpop.eup %1111  ;;  %v1037_v42 = vmul.f32 -1.442695, %v1316_v36  ;;  %v165_v43 = vadd.f32 %v1110_v26, %v164_v37 }
  0xa9   :  { %v1114_v44 = vpop.eup %1113  ;;  %v159_v45 = vadd.f32 1.0, %v1112_v41 }
  0xaa   :  { %1115 = vpow2.f32 %v1037_v42  ;;  %v169_v47 = vsel %vm168_vm3, %v1110_v26, %v165_v43  ;;  %v177_v48 = vmul.f32 %v1114_v44, %v158_v27  ;;  %vm182_vm5 = vweird.f32 %v1114_v44  ;;  %v259_v26 = vld [vmem:[%s1753_s5 + $0x10] sm:$0xff]  ;;  %v260_v27 = vld [vmem:[%s1753_s5 + $0x18] sm:$0xff] }
  0xab   :  { %1117 = vrcp.f32 %v159_v45  ;;  %v174_v49 = vsel %vm171_vm4, %v173_v46, %v169_v47  ;;  %vm183_vm7 = vmor %vm181_vm6, %vm182_vm5  ;;  %v202_v63 = vand.u32 2147483648, %v159_v45  ;;  %v200_v1 = vand.u32 2147483647, %v159_v45  ;;  %300 = vmatpush.msra.mxu2 %v259_v26  ;;  %329 = vmatpush.msra.mxu3 %v260_v27  ;;  %v350_v43 = vld [vmem:[%s1754_s6 + $0x10] sm:$0xff]  ;;  %v139_v46 = vpop.f32.mrf.mxu1 }
  0xac   :  { %225 = vrot.lane.b32.xlu0 %v174_v49, %s1153_s19  ;;  %v178_v50 = vsub.f32 1.0, %v177_v48  ;;  %vm196_vm10 = vweird.f32 %v159_v45  ;;  %360 = vrot.lane.b32.xlu2 %v350_v43, %s1153_s19  ;;  %v250_v48 = vld [vmem:[%s1755_s2 + $0x8] sm:$0xff] }
  0xad   :  { %v203_v4 = vor.u32 1.1754944e-38, %v202_v63  ;;  %vm201_vm12 = vcmp.eq.f32.partialorder %v200_v1, 8.507059e+37  ;;  %301 = vmatpush.msra.mxu2 %v257_v28  ;;  %330 = vmatpush.msra.mxu3 %v258_v29  ;;  %v536_v1 = vld [vmem:[%s1756_s9 + $0x30] sm:$0xff]  ;;  %v363_v28 = vpop.permute.xlu2 %362 }
  0xae   :  { %v179_v52 = vmul.f32 %v1114_v44, %v178_v50  ;;  %v140_v50 = vadd.f32 %v139_v46, %v71_v32  ;;  %v344_v46 = vld [vmem:[%s1759_s7] sm:$0xff] }
  0xb0   :  { %v1116_v54 = vpop.eup %1115  ;;  %v180_v55 = vadd.f32 %v1114_v44, %v179_v52 }
  0xb1   :  { %v1118_v56 = vpop.eup %1117  ;;  %v160_v57 = vadd.f32 1.0, %v1116_v54 }
  0xb2   :  { %v184_v59 = vsel %vm183_vm7, %v1114_v44, %v180_v55  ;;  %v192_v60 = vmul.f32 %v1118_v56, %v159_v45  ;;  %vm197_vm9 = vweird.f32 %v1118_v56  ;;  %v251_v55 = vld [vmem:[%s1755_s2 + $0x10] sm:$0xff] }
  0xb3   :  { %1119 = vrcp.f32 %v160_v57  ;;  %v189_v61 = vsel %vm186_vm8, %v188_v58, %v184_v59  ;;  %vm198_vm11 = vmor %vm196_vm10, %vm197_vm9  ;;  %v217_v9 = vand.u32 2147483648, %v160_v57  ;;  %v215_v11 = vand.u32 2147483647, %v160_v57  ;;  %v142_v54 = vpop.f32.mrf.mxu1 }
  0xb4   :  { %227 = vrot.lane.b32.xlu0 %v189_v61, %s1153_s19  ;;  %v193_v62 = vsub.f32 1.0, %v192_v60  ;;  %vm211_vm14 = vweird.f32 %v160_v57  ;;  %v252_v61 = vld [vmem:[%s1755_s2 + $0x18] sm:$0xff] }
  0xb5   :  { %v218_v14 = vor.u32 1.1754944e-38, %v217_v9  ;;  %vm216_vm1 = vcmp.eq.f32.partialorder %v215_v11, 8.507059e+37  ;;  %v532_v9 = vld [vmem:[%s1756_s9 + $0x10] sm:$0xff]  ;;  %v531_v11 = vld [vmem:[%s1756_s9 + $0x8] sm:$0xff] }
  0xb6   :  { %v194_v0 = vmul.f32 %v1118_v56, %v193_v62 }
  0xb8   :  { %v195_v2 = vadd.f32 %v1118_v56, %v194_v0  ;;  %v537_v0 = vld [vmem:[%s1756_s9 + $0x38] sm:$0xff] }
  0xb9   :  { %v1120_v3 = vpop.eup %1119  ;;  %558 = vmatpush.msrb.mxu2 %v537_v0 }
  0xba   :  { %v199_v5 = vsel %vm198_vm11, %v1118_v56, %v195_v2  ;;  %v207_v6 = vmul.f32 %v1120_v3, %v160_v57  ;;  %vm212_vm13 = vweird.f32 %v1120_v3  ;;  %v143_v57 = vadd.f32 %v142_v54, %v71_v32  ;;  %v645_v2 = vld [vmem:[%s1757_s11 + $0x30] sm:$0xff] }
  0xbb   :  { %v204_v7 = vsel %vm201_vm12, %v203_v4, %v199_v5  ;;  %vm213_vm15 = vmor %vm211_vm14, %vm212_vm13  ;;  %559 = vmatpush.msrb.mxu2 %v536_v1  ;;  %v644_v4 = vld [vmem:[%s1757_s11 + $0x28] sm:$0xff]  ;;  %v534_v5 = vld [vmem:[%s1756_s9 + $0x20] sm:$0xff] }
  0xbc   :  { %229 = vrot.lane.b32.xlu1 %v204_v7, %s1153_s19  ;;  %v208_v8 = vsub.f32 1.0, %v207_v6  ;;  %358 = vrot.lane.b32.xlu0 %v349_v38, %s1153_s19  ;;  %v643_v6 = vld [vmem:[%s1757_s11 + $0x20] sm:$0xff]  ;;  %v533_v7 = vld [vmem:[%s1756_s9 + $0x18] sm:$0xff] }
  0xbe   :  { %v209_v10 = vmul.f32 %v1120_v3, %v208_v8  ;;  %v642_v8 = vld [vmem:[%s1757_s11 + $0x18] sm:$0xff] }
  0xc0   :  { %v210_v13 = vadd.f32 %v1120_v3, %v209_v10  ;;  %v641_v10 = vld [vmem:[%s1757_s11 + $0x10] sm:$0xff] }
  0xc2   :  { %v214_v16 = vsel %vm213_vm15, %v1120_v3, %v210_v13  ;;  %v535_v3 = vld [vmem:[%s1756_s9 + $0x28] sm:$0xff] }
  0xc3   :  { %v219_v17 = vsel %vm216_vm1, %v218_v14, %v214_v16  ;;  %560 = vmatpush.msrb.mxu2 %v535_v3  ;;  %v640_v13 = vld [vmem:[%s1757_s11 + $0x8] sm:$0xff]  ;;  %v530_v14 = vld [vmem:[%s1756_s9] sm:$0xff] }
  0xc4   :  { %231 = vrot.lane.b32.xlu1 %v219_v17, %s1153_s19  ;;  %v639_v16 = vld [vmem:[%s1757_s11] sm:$0xff] }
  0xc5   :  { %561 = vmatpush.msrb.mxu2 %v534_v5  ;;  %v494_v3 = vld [vmem:[%s1760_s1] sm:$0xff] }
  0xc6   :  { %vm498_vm7 = vcmp.gt.f32.partialorder %v494_v3, 0.0  ;;  %v702_v3 = vld [vmem:[%s1761_s13 + $0x30] sm:$0xff] }
  0xc7   :  { %562 = vmatpush.msrb.mxu2 %v533_v7  ;;  %v495_v7 = vld [vmem:[%s1760_s1 + $0x8] sm:$0xff] }
  0xc8   :  { %vm499_vm8 = vcmp.gt.f32.partialorder %v495_v7, 0.0 }
  0xc9   :  { %563 = vmatpush.msrb.mxu2 %v532_v9 }
  0xcb   :  { %564 = vmatpush.msrb.mxu2 %v531_v11  ;;  %v496_v11 = vld [vmem:[%s1760_s1 + $0x10] sm:$0xff] }
  0xcc   :  { %356 = vrot.lane.b32.xlu1 %v348_v31, %s1153_s19  ;;  %vm500_vm9 = vcmp.gt.f32.partialorder %v496_v11, 0.0 }
  0xcd   :  { %565 = vmatpush.msrb.mxu2 %v530_v14 }
 0x106   :  { %v361_v31 = vpop.permute.xlu2 %360 }
 0x11e   :  { %v226_v34 = vpop.permute.xlu0 %225 }
 0x11f   :  { %v237_v37 = vadd.f32 %v226_v34, %v1293_v15  ;;  %v137_v15 = vadd.f32 %v136_v35, %v71_v32 }
 0x121   :  { %v241_v40 = vadd.f32 %v237_v37, %v134_v33 }
 0x123   :  { %v245_v41 = vmax.f32 %v241_v40, 0.0 }
 0x125   :  { %v253_v42 = vadd.f32 %v249_v12, %v245_v41  ;;  %v452_v12 = vld [vmem:[%s1758_s8 + $0x38] sm:$0xff]  ;;  %v451_v41 = vld [vmem:[%s1758_s8 + $0x30] sm:$0xff] }
 0x126   :  { %v228_v44 = vpop.permute.xlu0 %227  ;;  %473 = vmatpush.msrb.mxu1 %v452_v12 }
 0x127   :  { %v238_v45 = vadd.f32 %v228_v44, %v1297_v18  ;;  %1038 = vmatmul.msk.f32.vlgmr.msra.gmra.mxu2 %vm273_vm2, %v253_v42  ;;  %1042 = vmatmul.msk.f32.vlgmr.msra.gmra.mxu3 %vm273_vm2, %v253_v42  ;;  %v450_v42 = vld [vmem:[%s1758_s8 + $0x28] sm:$0xff]  ;;  %v449_v44 = vld [vmem:[%s1758_s8 + $0x20] sm:$0xff] }
 0x128   :  { %474 = vmatpush.msrb.mxu1 %v451_v41 }
 0x129   :  { %v242_v47 = vadd.f32 %v238_v45, %v137_v15 }
 0x12a   :  { %475 = vmatpush.msrb.mxu1 %v450_v42 }
 0x12b   :  { %v246_v49 = vmax.f32 %v242_v47, 0.0  ;;  %v448_v47 = vld [vmem:[%s1758_s8 + $0x18] sm:$0xff] }
 0x12c   :  { %476 = vmatpush.msrb.mxu1 %v449_v44 }
 0x12d   :  { %v254_v51 = vadd.f32 %v250_v48, %v246_v49  ;;  %v345_v48 = vld [vmem:[%s1759_s7 + $0x8] sm:$0xff]  ;;  %v346_v49 = vld [vmem:[%s1759_s7 + $0x10] sm:$0xff] }
 0x12e   :  { %v230_v52 = vpop.permute.xlu1 %229  ;;  %v359_v21 = vpop.permute.xlu0 %358  ;;  %477 = vmatpush.msrb.mxu1 %v448_v47 }
 0x12f   :  { %v239_v53 = vadd.f32 %v230_v52, %v1301_v23  ;;  %1039 = vmatmul.msk.f32.gmra.mxu2 %vm273_vm2, %v254_v51  ;;  %1043 = vmatmul.msk.f32.gmra.mxu3 %vm273_vm2, %v254_v51  ;;  %v447_v51 = vld [vmem:[%s1758_s8 + $0x10] sm:$0xff]  ;;  %v446_v52 = vld [vmem:[%s1758_s8 + $0x8] sm:$0xff] }
 0x130   :  { %478 = vmatpush.msrb.mxu1 %v447_v51 }
 0x131   :  { %v243_v18 = vadd.f32 %v239_v53, %v140_v50  ;;  %v347_v50 = vld [vmem:[%s1759_s7 + $0x18] sm:$0xff]  ;;  %v445_v53 = vld [vmem:[%s1758_s8] sm:$0xff] }
 0x132   :  { %479 = vmatpush.msrb.mxu1 %v446_v52 }
 0x133   :  { %v247_v56 = vmax.f32 %v243_v18, 0.0 }
 0x134   :  { %480 = vmatpush.msrb.mxu1 %v445_v53 }
 0x135   :  { %v255_v58 = vadd.f32 %v251_v55, %v247_v56 }
 0x136   :  { %v232_v59 = vpop.permute.xlu1 %231 }
 0x137   :  { %v240_v60 = vadd.f32 %v232_v59, %v1316_v36  ;;  %1040 = vmatmul.msk.f32.gmra.mxu2 %vm273_vm2, %v255_v58  ;;  %1044 = vmatmul.msk.f32.gmra.mxu3 %vm273_vm2, %v255_v58  ;;  %v646_v36 = vld [vmem:[%s1757_s11 + $0x38] sm:$0xff] }
 0x138   :  { %667 = vmatpush.msrb.mxu3 %v646_v36 }
 0x139   :  { %v244_v23 = vadd.f32 %v240_v60, %v143_v57 }
 0x13a   :  { %668 = vmatpush.msrb.mxu3 %v645_v2 }
 0x13b   :  { %v248_v62 = vmax.f32 %v244_v23, 0.0 }
 0x13c   :  { %669 = vmatpush.msrb.mxu3 %v644_v4 }
 0x13d   :  { %v256_v63 = vadd.f32 %v252_v61, %v248_v62 }
 0x13e   :  { %670 = vmatpush.msrb.mxu3 %v643_v6  ;;  %v357_v20 = vpop.permute.xlu1 %356 }
 0x13f   :  { %1041 = vmatmul.msk.f32.gmra.mxu2 %vm273_vm2, %v256_v63  ;;  %1045 = vmatmul.msk.f32.gmra.mxu3 %vm273_vm2, %v256_v63 }
 0x140   :  { %671 = vmatpush.msrb.mxu3 %v642_v8 }
 0x142   :  { %672 = vmatpush.msrb.mxu3 %v641_v10 }
 0x144   :  { %673 = vmatpush.msrb.mxu3 %v640_v13 }
 0x146   :  { %674 = vmatpush.msrb.mxu3 %v639_v16 }
 0x1aa   :  { %v1448_v17 = vpop.f32.mrf.mxu2  ;;  %v332_v19 = vpop.f32.mrf.mxu3 }
 0x1ab   :  { %v368_v25 = vmul.f32 %v357_v20, %v1448_v17 }
 0x1b2   :  { %v1450_v22 = vpop.f32.mrf.mxu2  ;;  %v335_v24 = vpop.f32.mrf.mxu3 }
 0x1b3   :  { %v369_v26 = vmul.f32 %v359_v21, %v1450_v22 }
 0x1b5   :  { %v1097_v27 = vpack.i.bf16 %v368_v25, %v369_v26 }
 0x1b7   :  { %1098 = vrot.lane.b32.xlu0 %v1097_v27, %s1153_s19 }
 0x1ba   :  { %v1455_v29 = vpop.f32.mrf.mxu2  ;;  %v338_v30 = vpop.f32.mrf.mxu3 }
 0x1bb   :  { %v370_v34 = vmul.f32 %v361_v31, %v1455_v29 }
 0x1c2   :  { %v1457_v32 = vpop.f32.mrf.mxu2  ;;  %v341_v33 = vpop.f32.mrf.mxu3 }
 0x1c3   :  { %v371_v35 = vmul.f32 %v363_v28, %v1457_v32  ;;  %1082 = vmatpush.msra.mxu2 %v341_v33  ;;  %1083 = vmatpush.msra.mxu3 %v341_v33 }
 0x1c5   :  { %v1092_v37 = vpack.i.bf16 %v370_v34, %v371_v35  ;;  %1084 = vmatpush.msra.mxu2 %v338_v30  ;;  %1085 = vmatpush.msra.mxu3 %v338_v30 }
 0x1c7   :  { %1086 = vmatpush.msra.mxu2 %v335_v24  ;;  %1087 = vmatpush.msra.mxu3 %v335_v24 }
 0x1c8   :  { %1093 = vrot.lane.b32.xlu2 %v1092_v37, %s1153_s19 }
 0x1c9   :  { %1088 = vmatpush.msra.mxu2 %v332_v19  ;;  %1089 = vmatpush.msra.mxu3 %v332_v19 }
 0x222   :  { %v1094_v38 = vpop.permute.xlu2 %1093 }
 0x223   :  { %v1095_v39 = vunpack.i.l.bf16 %v1094_v38  ;;  %v1096_v40 = vunpack.i.h.bf16 %v1094_v38 }
 0x225   :  { %412 = vmatpush.msrb.mxu0 %v1095_v39 }
 0x227   :  { %413 = vmatpush.msrb.mxu0 %v1096_v40 }
 0x229   :  { %v1099_v15 = vpop.permute.xlu0 %1098 }
 0x22a   :  { %v1100_v43 = vunpack.i.l.bf16 %v1099_v15  ;;  %v1101_v45 = vunpack.i.h.bf16 %v1099_v15 }
 0x22c   :  { %414 = vmatpush.msrb.mxu0 %v1100_v43 }
 0x22e   :  { %415 = vmatpush.msrb.mxu0 %v1101_v45 }
 0x22f   :  { %1046 = vmatmul.msk.f32.vlgmr.msrb.gmra.mxu0 %vm74_vm0, %v344_v46 }
 0x230   :  { %772 = vmatpush.msra.mxu0 %v341_v33 }
 0x232   :  { %773 = vmatpush.msra.mxu0 %v338_v30 }
 0x234   :  { %774 = vmatpush.msra.mxu0 %v335_v24 }
 0x236   :  { %775 = vmatpush.msra.mxu0 %v332_v19 }
 0x237   :  { %1047 = vmatmul.msk.f32.gmra.mxu0 %vm74_vm0, %v345_v48 }
 0x23f   :  { %1048 = vmatmul.msk.f32.gmra.mxu0 %vm74_vm0, %v346_v49 }
 0x247   :  { %1049 = vmatmul.msk.f32.gmra.mxu0 %vm74_vm0, %v347_v50 }
 0x2ac   :  { %v417_v18 = vpop.f32.mrf.mxu0 }
 0x2ad   :  { %v429_v54 = vadd.f32 %v417_v18, %v1448_v17  ;;  %v497_v17 = vld [vmem:[%s1760_s1 + $0x18] sm:$0xff] }
 0x2ae   :  { %vm501_vm10 = vcmp.gt.f32.partialorder %v497_v17, 0.0  ;;  %v696_v17 = vld [vmem:[%s1761_s13] sm:$0xff] }
 0x2af   :  { %vm433_vm3 = vcmp.gt.f32.partialorder %v429_v54, 0.0  ;;  %v437_v55 = vmul.f32 0.2, %v429_v54  ;;  %1062 = vmatmul.msk.f32.vlgmr.msra.gmra.mxu0 %vm74_vm0, %v696_v17 }
 0x2b1   :  { %v441_v56 = vsel %vm433_vm3, %v429_v54, %v437_v55 }
 0x2b2   :  { %1050 = vmatmul.msk.f32.vlgmr.msrb.gmra.mxu1 %vm273_vm2, %v441_v56 }
 0x2b4   :  { %v420_v57 = vpop.f32.mrf.mxu0 }
 0x2b5   :  { %v430_v58 = vadd.f32 %v420_v57, %v1450_v22 }
 0x2b7   :  { %v438_v59 = vmul.f32 0.2, %v430_v58  ;;  %vm434_vm4 = vcmp.gt.f32.partialorder %v430_v58, 0.0 }
 0x2b9   :  { %v442_v60 = vsel %vm434_vm4, %v430_v58, %v438_v59 }
 0x2ba   :  { %1051 = vmatmul.msk.f32.gmra.mxu1 %vm273_vm2, %v442_v60 }
 0x2bc   :  { %v423_v23 = vpop.f32.mrf.mxu0 }
 0x2bd   :  { %v431_v61 = vadd.f32 %v423_v23, %v1455_v29 }
 0x2bf   :  { %v439_v62 = vmul.f32 0.2, %v431_v61  ;;  %vm435_vm5 = vcmp.gt.f32.partialorder %v431_v61, 0.0 }
 0x2c1   :  { %v443_v63 = vsel %vm435_vm5, %v431_v61, %v439_v62 }
 0x2c2   :  { %1052 = vmatmul.msk.f32.gmra.mxu1 %vm273_vm2, %v443_v63 }
 0x2c4   :  { %v426_v0 = vpop.f32.mrf.mxu0 }
 0x2c5   :  { %v432_v36 = vadd.f32 %v426_v0, %v1457_v32 }
 0x2c7   :  { %v440_v1 = vmul.f32 0.2, %v432_v36  ;;  %vm436_vm6 = vcmp.gt.f32.partialorder %v432_v36, 0.0 }
 0x2c9   :  { %v444_v2 = vsel %vm436_vm6, %v432_v36, %v440_v1 }
 0x2ca   :  { %1053 = vmatmul.msk.f32.gmra.mxu1 %vm273_vm2, %v444_v2 }
 0x32f   :  { %v482_v4 = vpop.f32.mrf.mxu1 }
 0x330   :  { %v502_v5 = vsel %vm498_vm7, %v482_v4, -9e+15 }
 0x331   :  { %v506_v6 = vsel %vm273_vm2, %v502_v5, -inf }
 0x332   :  { %507 = vmax.xlane.f32.xlu1 %v506_v6 }
 0x337   :  { %v485_v8 = vpop.f32.mrf.mxu1 }
 0x338   :  { %v503_v9 = vsel %vm499_vm8, %v485_v8, -9e+15 }
 0x339   :  { %v509_v10 = vsel %vm273_vm2, %v503_v9, -inf }
 0x33a   :  { %510 = vmax.xlane.f32.xlu2 %v509_v10 }
 0x33f   :  { %v488_v13 = vpop.f32.mrf.mxu1 }
 0x340   :  { %v504_v14 = vsel %vm500_vm9, %v488_v13, -9e+15 }
 0x341   :  { %v512_v16 = vsel %vm273_vm2, %v504_v14, -inf }
 0x342   :  { %513 = vmax.xlane.f32.xlu0 %v512_v16 }
 0x347   :  { %v491_v19 = vpop.f32.mrf.mxu1 }
 0x348   :  { %v505_v20 = vsel %vm501_vm10, %v491_v19, -9e+15  ;;  %v703_v19 = vld [vmem:[%s1761_s13 + $0x38] sm:$0xff] }
 0x349   :  { %v515_v21 = vsel %vm273_vm2, %v505_v20, -inf }
 0x34a   :  { %516 = vmax.xlane.f32.xlu2 %v515_v21 }
 0x3a5   :  { %v508_v22 = vpop.xlane.xlu1 %507 }
 0x3a6   :  { %v518_v24 = vsub.f32 %v502_v5, %v508_v22 }
 0x3a8   :  { %v522_v25 = vmul.f32 1.442695, %v518_v24 }
 0x3aa   :  { %1121 = vpow2.f32 %v522_v25 }
 0x3ad   :  { %v511_v26 = vpop.xlane.xlu2 %510 }
 0x3ae   :  { %v519_v27 = vsub.f32 %v503_v9, %v511_v26  ;;  %v697_v26 = vld [vmem:[%s1761_s13 + $0x8] sm:$0xff] }
 0x3af   :  { %1063 = vmatmul.msk.f32.gmra.mxu0 %vm74_vm0, %v697_v26 }
 0x3b0   :  { %v1122_v28 = vpop.eup %1121  ;;  %v524_v29 = vmul.f32 1.442695, %v519_v27  ;;  %v704_v27 = vld [vmem:[%s1761_s13 + $0x40] sm:$0xff] }
 0x3b1   :  { %1054 = vmatmul.msk.f32.vlgmr.msrb.gmra.mxu2 %vm273_vm2, %v1122_v28 }
 0x3b2   :  { %1123 = vpow2.f32 %v524_v29  ;;  %v698_v29 = vld [vmem:[%s1761_s13 + $0x10] sm:$0xff] }
 0x3b5   :  { %v514_v30 = vpop.xlane.xlu0 %513 }
 0x3b6   :  { %v520_v31 = vsub.f32 %v504_v14, %v514_v30  ;;  %v705_v30 = vld [vmem:[%s1761_s13 + $0x48] sm:$0xff] }
 0x3b7   :  { %1064 = vmatmul.msk.f32.gmra.mxu0 %vm74_vm0, %v698_v29  ;;  %v689_v29 = vld [vmem:[%s1763_s12 + $0x8] sm:$0xff] }
 0x3b8   :  { %v1124_v32 = vpop.eup %1123  ;;  %v526_v33 = vmul.f32 1.442695, %v520_v31  ;;  %v708_v31 = vld [vmem:[%s1761_s13 + $0x60] sm:$0xff] }
 0x3b9   :  { %1055 = vmatmul.msk.f32.gmra.mxu2 %vm273_vm2, %v1124_v32 }
 0x3ba   :  { %1125 = vpow2.f32 %v526_v33  ;;  %v706_v33 = vld [vmem:[%s1761_s13 + $0x50] sm:$0xff] }
 0x3bd   :  { %v517_v34 = vpop.xlane.xlu2 %516 }
 0x3be   :  { %v521_v35 = vsub.f32 %v505_v20, %v517_v34  ;;  %v709_v34 = vld [vmem:[%s1761_s13 + $0x68] sm:$0xff] }
 0x3c0   :  { %v1528_v37 = vpop.eup %1125  ;;  %v528_v38 = vmul.f32 1.442695, %v521_v35  ;;  %v700_v35 = vld [vmem:[%s1761_s13 + $0x20] sm:$0xff] }
 0x3c1   :  { %1056 = vmatmul.msk.f32.gmra.mxu2 %vm273_vm2, %v1528_v37 }
 0x3c2   :  { %1127 = vpow2.f32 %v528_v38  ;;  %v701_v38 = vld [vmem:[%s1761_s13 + $0x28] sm:$0xff] }
 0x3c8   :  { %v1532_v39 = vpop.eup %1127 }
 0x3c9   :  { %1057 = vmatmul.msk.f32.gmra.mxu2 %vm273_vm2, %v1532_v39 }
 0x3d1   :  { %1068 = vmatmul.msk.f32.vlgmr.msra.gmra.mxu2 %vm74_vm0, %v702_v3  ;;  %v833_v3 = vld [vmem:[%s1762_s14 + $0x40] sm:$0xff] }
 0x3d9   :  { %1069 = vmatmul.msk.f32.gmra.mxu2 %vm74_vm0, %v703_v19  ;;  %v827_v19 = vld [vmem:[%s1762_s14 + $0x10] sm:$0xff] }
 0x3e1   :  { %1070 = vmatmul.msk.f32.gmra.mxu2 %vm74_vm0, %v704_v27 }
 0x3e9   :  { %1071 = vmatmul.msk.f32.gmra.mxu2 %vm74_vm0, %v705_v30 }
 0x3f1   :  { %1072 = vmatmul.msk.f32.gmra.mxu2 %vm74_vm0, %v706_v33  ;;  %v691_v33 = vld [vmem:[%s1763_s12 + $0x18] sm:$0xff] }
 0x434   :  { %v567_v40 = vpop.f32.mrf.mxu2 }
 0x435   :  { %1129 = vrcp.f32 %v567_v40  ;;  %v590_v43 = vand.u32 2147483648, %v567_v40  ;;  %v588_v45 = vand.u32 2147483647, %v567_v40  ;;  %vm584_vm12 = vweird.f32 %v567_v40 }
 0x437   :  { %v591_v48 = vor.u32 1.1754944e-38, %v590_v43  ;;  %vm589_vm14 = vcmp.eq.f32.partialorder %v588_v45, 8.507059e+37  ;;  %v1614_v43 = vpop.f32.mrf.mxu0 }
 0x43b   :  { %v1130_v12 = vpop.eup %1129 }
 0x43c   :  { %v580_v41 = vmul.f32 %v1130_v12, %v567_v40  ;;  %v570_v15 = vpop.f32.mrf.mxu2  ;;  %vm585_vm11 = vweird.f32 %v1130_v12 }
 0x43d   :  { %1131 = vrcp.f32 %v570_v15  ;;  %vm586_vm13 = vmor %vm584_vm12, %vm585_vm11  ;;  %v605_v54 = vand.u32 2147483648, %v570_v15  ;;  %v603_v56 = vand.u32 2147483647, %v570_v15  ;;  %vm599_vm1 = vweird.f32 %v570_v15 }
 0x43e   :  { %v581_v42 = vsub.f32 1.0, %v580_v41 }
 0x43f   :  { %v606_v59 = vor.u32 1.1754944e-38, %v605_v54  ;;  %vm604_vm4 = vcmp.eq.f32.partialorder %v603_v56, 8.507059e+37  ;;  %v839_v54 = vld [vmem:[%s1762_s14 + $0x70] sm:$0xff] }
 0x440   :  { %v582_v44 = vmul.f32 %v1130_v12, %v581_v42 }
 0x442   :  { %v583_v46 = vadd.f32 %v1130_v12, %v582_v44 }
 0x443   :  { %v1132_v47 = vpop.eup %1131 }
 0x444   :  { %v595_v49 = vmul.f32 %v1132_v47, %v570_v15  ;;  %v573_v50 = vpop.f32.mrf.mxu2  ;;  %v587_v51 = vsel %vm586_vm13, %v1130_v12, %v583_v46  ;;  %vm600_vm15 = vweird.f32 %v1132_v47 }
 0x445   :  { %1133 = vrcp.f32 %v573_v50  ;;  %v592_v52 = vsel %vm589_vm14, %v591_v48, %v587_v51  ;;  %vm601_vm3 = vmor %vm599_vm1, %vm600_vm15  ;;  %v620_v36 = vand.u32 2147483648, %v573_v50  ;;  %v618_v2 = vand.u32 2147483647, %v573_v50 }
 0x446   :  { %v596_v53 = vsub.f32 1.0, %v595_v49  ;;  %v593_v18 = vmul.f32 %v1122_v28, %v592_v52  ;;  %vm614_vm6 = vweird.f32 %v573_v50  ;;  %v707_v28 = vld [vmem:[%s1761_s13 + $0x58] sm:$0xff] }
 0x447   :  { %v621_v6 = vor.u32 1.1754944e-38, %v620_v36  ;;  %vm619_vm8 = vcmp.eq.f32.partialorder %v618_v2, 8.507059e+37  ;;  %v834_v2 = vld [vmem:[%s1762_s14 + $0x48] sm:$0xff] }
 0x448   :  { %v597_v55 = vmul.f32 %v1132_v47, %v596_v53  ;;  %1058 = vmatmul.msk.f32.vlgmr.msrb.gmra.mxu3 %vm273_vm2, %v593_v18  ;;  %v840_v18 = vld [vmem:[%s1762_s14 + $0x78] sm:$0xff] }
 0x44a   :  { %v598_v57 = vadd.f32 %v1132_v47, %v597_v55 }
 0x44b   :  { %v1134_v58 = vpop.eup %1133 }
 0x44c   :  { %v610_v60 = vmul.f32 %v1134_v58, %v573_v50  ;;  %v576_v23 = vpop.f32.mrf.mxu2  ;;  %v602_v61 = vsel %vm601_vm3, %v1132_v47, %v598_v57  ;;  %vm615_vm5 = vweird.f32 %v1134_v58  ;;  %v780_v47 = vpop.f32.mrf.mxu0  ;;  %v838_v57 = vld [vmem:[%s1762_s14 + $0x68] sm:$0xff] }
 0x44d   :  { %1135 = vrcp.f32 %v576_v23  ;;  %v607_v62 = vsel %vm604_vm4, %v606_v59, %v602_v61  ;;  %vm616_vm7 = vmor %vm614_vm6, %vm615_vm5  ;;  %v635_v13 = vand.u32 2147483648, %v576_v23  ;;  %v633_v16 = vand.u32 2147483647, %v576_v23  ;;  %v837_v59 = vld [vmem:[%s1762_s14 + $0x60] sm:$0xff] }
 0x44e   :  { %v611_v63 = vsub.f32 1.0, %v610_v60  ;;  %v608_v0 = vmul.f32 %v1124_v32, %v607_v62  ;;  %vm629_vm10 = vweird.f32 %v576_v23  ;;  %v699_v32 = vld [vmem:[%s1761_s13 + $0x18] sm:$0xff]  ;;  %v835_v62 = vld [vmem:[%s1762_s14 + $0x50] sm:$0xff] }
 0x44f   :  { %v636_v21 = vor.u32 1.1754944e-38, %v635_v13  ;;  %vm634_vm12 = vcmp.eq.f32.partialorder %v633_v16, 8.507059e+37  ;;  %1065 = vmatmul.msk.f32.gmra.mxu0 %vm74_vm0, %v699_v32  ;;  %v828_v16 = vld [vmem:[%s1762_s14 + $0x18] sm:$0xff] }
 0x450   :  { %v612_v1 = vmul.f32 %v1134_v58, %v611_v63  ;;  %1059 = vmatmul.msk.f32.gmra.mxu3 %vm273_vm2, %v608_v0 }
 0x452   :  { %v613_v4 = vadd.f32 %v1134_v58, %v612_v1 }
 0x453   :  { %v1136_v5 = vpop.eup %1135 }
 0x454   :  { %v625_v7 = vmul.f32 %v1136_v5, %v576_v23  ;;  %v617_v8 = vsel %vm616_vm7, %v1134_v58, %v613_v4  ;;  %vm630_vm9 = vweird.f32 %v1136_v5  ;;  %v795_v42 = vpop.f32.mrf.mxu2  ;;  %v783_v50 = vpop.f32.mrf.mxu0  ;;  %v836_v23 = vld [vmem:[%s1762_s14 + $0x58] sm:$0xff] }
 0x455   :  { %v622_v9 = vsel %vm619_vm8, %v621_v6, %v617_v8  ;;  %vm631_vm11 = vmor %vm629_vm10, %vm630_vm9 }
 0x456   :  { %v626_v10 = vsub.f32 1.0, %v625_v7  ;;  %v623_v11 = vmul.f32 %v1528_v37, %v622_v9  ;;  %v710_v37 = vld [vmem:[%s1761_s13 + $0x70] sm:$0xff]  ;;  %v830_v9 = vld [vmem:[%s1762_s14 + $0x28] sm:$0xff] }
 0x457   :  { %1066 = vmatmul.msk.f32.gmra.mxu0 %vm74_vm0, %v700_v35  ;;  %v831_v7 = vld [vmem:[%s1762_s14 + $0x30] sm:$0xff] }
 0x458   :  { %v627_v14 = vmul.f32 %v1136_v5, %v626_v10  ;;  %1060 = vmatmul.msk.f32.gmra.mxu3 %vm273_vm2, %v623_v11  ;;  %v847_v11 = vmul.f32 %v831_v7, %v795_v42 }
 0x45a   :  { %v628_v20 = vadd.f32 %v1136_v5, %v627_v14  ;;  %v829_v14 = vld [vmem:[%s1762_s14 + $0x20] sm:$0xff] }
 0x45c   :  { %v632_v22 = vsel %vm631_vm11, %v1136_v5, %v628_v20  ;;  %v798_v45 = vpop.f32.mrf.mxu2  ;;  %v832_v5 = vld [vmem:[%s1762_s14 + $0x38] sm:$0xff] }
 0x45d   :  { %v637_v24 = vsel %vm634_vm12, %v636_v21, %v632_v22  ;;  %v848_v10 = vmul.f32 %v832_v5, %v798_v45  ;;  %v826_v21 = vld [vmem:[%s1762_s14 + $0x8] sm:$0xff]  ;;  %v843_v22 = vmul.f32 %v827_v19, %v783_v50 }
 0x45e   :  { %v638_v25 = vmul.f32 %v1532_v39, %v637_v24  ;;  %v711_v39 = vld [vmem:[%s1761_s13 + $0x78] sm:$0xff]  ;;  %v825_v24 = vld [vmem:[%s1762_s14] sm:$0xff]  ;;  %v842_v26 = vmul.f32 %v826_v21, %v780_v47 }
 0x45f   :  { %1067 = vmatmul.msk.f32.gmra.mxu0 %vm74_vm0, %v701_v38  ;;  %v841_v27 = vmul.f32 %v825_v24, %v1614_v43 }
 0x460   :  { %1061 = vmatmul.msk.f32.gmra.mxu3 %vm273_vm2, %v638_v25  ;;  %v688_v25 = vld [vmem:[%s1763_s12] sm:$0xff] }
 0x464   :  { %v801_v49 = vpop.f32.mrf.mxu2 }
 0x465   :  { %v849_v6 = vmul.f32 %v833_v3, %v801_v49 }
 0x468   :  { %1073 = vmatmul.msk.f32.vlgmr.msra.gmra.mxu3 %vm74_vm0, %v707_v28 }
 0x46c   :  { %v804_v52 = vpop.f32.mrf.mxu2 }
 0x46d   :  { %v850_v4 = vmul.f32 %v834_v2, %v804_v52  ;;  %v1150_v52 = vld [vmem:[%s1751_s0 + $0x8] sm:$0xff] }
 0x470   :  { %1074 = vmatmul.msk.f32.gmra.mxu3 %vm74_vm0, %v708_v31  ;;  %v690_v31 = vld [vmem:[%s1763_s12 + $0x10] sm:$0xff] }
 0x474   :  { %v807_v61 = vpop.f32.mrf.mxu2 }
 0x475   :  { %v851_v1 = vmul.f32 %v835_v62, %v807_v61 }
 0x478   :  { %1075 = vmatmul.msk.f32.gmra.mxu3 %vm74_vm0, %v709_v34 }
 0x480   :  { %1076 = vmatmul.msk.f32.gmra.mxu3 %vm74_vm0, %v710_v37 }
 0x488   :  { %1077 = vmatmul.msk.f32.gmra.mxu3 %vm74_vm0, %v711_v39 }
 0x4cb   :  { %v1606_v40 = vpop.f32.mrf.mxu3 }
 0x4cc   :  { %v786_v53 = vpop.f32.mrf.mxu0  ;;  %v692_v28 = vmul.f32 %v688_v25, %v1606_v40 }
 0x4cd   :  { %v844_v20 = vmul.f32 %v828_v16, %v786_v53 }
 0x4d3   :  { %v1608_v12 = vpop.f32.mrf.mxu3 }
 0x4d4   :  { %v789_v63 = vpop.f32.mrf.mxu0  ;;  %v693_v30 = vmul.f32 %v689_v29, %v1608_v12 }
 0x4d5   :  { %v845_v17 = vmul.f32 %v829_v14, %v789_v63 }
 0x4db   :  { %v1610_v41 = vpop.f32.mrf.mxu3 }
 0x4dc   :  { %v792_v8 = vpop.f32.mrf.mxu0  ;;  %v694_v32 = vmul.f32 %v690_v31, %v1610_v41 }
 0x4dd   :  { %v846_v13 = vmul.f32 %v830_v9, %v792_v8 }
 0x4e3   :  { %v1612_v15 = vpop.f32.mrf.mxu3 }
 0x4e4   :  { %v695_v34 = vmul.f32 %v691_v33, %v1612_v15 }
 0x4eb   :  { %v810_v44 = vpop.f32.mrf.mxu3 }
 0x4ec   :  { %v852_v36 = vmul.f32 %v836_v23, %v810_v44  ;;  %v1149_v44 = vld [vmem:[%s1751_s0] sm:$0xff] }
 0x4f3   :  { %v813_v46 = vpop.f32.mrf.mxu3 }
 0x4f4   :  { %v853_v0 = vmul.f32 %v837_v59, %v813_v46 }
 0x4fb   :  { %v816_v48 = vpop.f32.mrf.mxu3 }
 0x4fc   :  { %v854_v60 = vmul.f32 %v838_v57, %v816_v48 }
 0x503   :  { %v819_v51 = vpop.f32.mrf.mxu3 }
 0x504   :  { %v855_v58 = vmul.f32 %v839_v54, %v819_v51 }
 0x50b   :  { %v822_v55 = vpop.f32.mrf.mxu3 }
 0x50c   :  { %v856_v56 = vmul.f32 %v840_v18, %v822_v55 }
 0x50e   :  { %857 = vmatpush.msra.mxu1 %v856_v56 }
 0x510   :  { %858 = vmatpush.msra.mxu1 %v855_v58 }
 0x512   :  { %859 = vmatpush.msra.mxu1 %v854_v60  ;;  %v1151_v60 = vld [vmem:[%s1751_s0 + $0x10] sm:$0xff] }
 0x514   :  { %860 = vmatpush.msra.mxu1 %v853_v0 }
 0x516   :  { %861 = vmatpush.msra.mxu1 %v852_v36  ;;  %v1152_v36 = vld [vmem:[%s1751_s0 + $0x18] sm:$0xff] }
 0x518   :  { %862 = vmatpush.msra.mxu1 %v851_v1 }
 0x51a   :  { %863 = vmatpush.msra.mxu1 %v850_v4 }
 0x51c   :  { %864 = vmatpush.msra.mxu1 %v849_v6 }
 0x51e   :  { %865 = vmatpush.msra.mxu1 %v848_v10 }
 0x520   :  { %866 = vmatpush.msra.mxu1 %v847_v11 }
 0x522   :  { %867 = vmatpush.msra.mxu1 %v846_v13 }
 0x524   :  { %868 = vmatpush.msra.mxu1 %v845_v17 }
 0x526   :  { %869 = vmatpush.msra.mxu1 %v844_v20 }
 0x528   :  { %870 = vmatpush.msra.mxu1 %v843_v22 }
 0x52a   :  { %871 = vmatpush.msra.mxu1 %v842_v26 }
 0x52c   :  { %872 = vmatpush.msra.mxu1 %v841_v27  ;;  %v1154_v27 = vmov 0  }
 0x52d   :  { %873 = vmatmul.f32.vlgmr.msra.gmra.mxu1 %v692_v28  ;;  %1102 = vset.pattern.permute.xlu0 %v1154_v27 }
 0x52e   :  { %1104 = vset.pattern.permute.xlu2 %v1154_v27  ;;  %1103 = vset.pattern.permute.xlu1 %v1154_v27 }
 0x535   :  { %876 = vmatmul.f32.gmra.mxu1 %v693_v30 }
 0x53d   :  { %879 = vmatmul.f32.gmra.mxu1 %v694_v32 }
 0x545   :  { %882 = vmatmul.f32.gmra.mxu1 %v695_v34 }
 0x5aa   :  { %v874_v35 = vpop.f32.mrf.mxu1 }
 0x5ab   :  { %v890_v37 = vmin.f32 %v874_v35, 0.0  ;;  %vm886_vm2 = vcmp.gt.f32.partialorder %v874_v35, 0.0 }
 0x5ad   :  { %v894_v38 = vmul.f32 1.442695, %v890_v37 }
 0x5af   :  { %1137 = vpow2.f32 %v894_v38 }
 0x5b2   :  { %v877_v39 = vpop.f32.mrf.mxu1 }
 0x5b3   :  { %v891_v40 = vmin.f32 %v877_v39, 0.0  ;;  %vm887_vm13 = vcmp.gt.f32.partialorder %v877_v39, 0.0 }
 0x5b5   :  { %v1138_v12 = vpop.eup %1137  ;;  %v896_v42 = vmul.f32 1.442695, %v891_v40 }
 0x5b6   :  { %v1078_v43 = vadd.f32 -1.0, %v1138_v12 }
 0x5b7   :  { %1139 = vpow2.f32 %v896_v42 }
 0x5b8   :  { %v906_v41 = vsel %vm886_vm2, %v874_v35, %v1078_v43 }
 0x5b9   :  { %v1684_v45 = vadd.f32 %v1149_v44, %v906_v41 }
 0x5ba   :  { %v880_v15 = vpop.f32.mrf.mxu1 }
 0x5bb   :  { %v892_v46 = vmin.f32 %v880_v15, 0.0  ;;  %v914_v47 = vsel %vm74_vm0, %v1684_v45, 0.0  ;;  %vm888_vm14 = vcmp.gt.f32.partialorder %v880_v15, 0.0 }
 0x5bc   :  { %915 = vadd.xlane.f32.xlu1 %v914_v47 }
 0x5bd   :  { %v1140_v48 = vpop.eup %1139  ;;  %v898_v49 = vmul.f32 1.442695, %v892_v46 }
 0x5be   :  { %v1079_v50 = vadd.f32 -1.0, %v1140_v48 }
 0x5bf   :  { %1141 = vpow2.f32 %v898_v49 }
 0x5c0   :  { %v907_v51 = vsel %vm887_vm13, %v877_v39, %v1079_v50 }
 0x5c1   :  { %v1691_v53 = vadd.f32 %v1150_v52, %v907_v51  ;;  %v980_v51 = vld [vmem:[%s1765_s16] sm:$0xff] }
 0x5c2   :  { %v883_v18 = vpop.f32.mrf.mxu1 }
 0x5c3   :  { %v893_v54 = vmin.f32 %v883_v18, 0.0  ;;  %v917_v55 = vsel %vm74_vm0, %v1691_v53, 0.0  ;;  %vm889_vm15 = vcmp.gt.f32.partialorder %v883_v18, 0.0 }
 0x5c4   :  { %918 = vadd.xlane.f32.xlu2 %v917_v55  ;;  %v955_v55 = vld [vmem:[%s1764_s15 + $0x8] sm:$0xff] }
 0x5c5   :  { %v1142_v56 = vpop.eup %1141  ;;  %v900_v57 = vmul.f32 1.442695, %v893_v54 }
 0x5c6   :  { %v1080_v58 = vadd.f32 -1.0, %v1142_v56 }
 0x5c7   :  { %1143 = vpow2.f32 %v900_v57 }
 0x5c8   :  { %v908_v59 = vsel %vm888_vm14, %v880_v15, %v1080_v58  ;;  %v954_v15 = vld [vmem:[%s1764_s15] sm:$0xff] }
 0x5c9   :  { %v1698_v23 = vadd.f32 %v1151_v60, %v908_v59  ;;  %v981_v60 = vld [vmem:[%s1765_s16 + $0x8] sm:$0xff] }
 0x5cb   :  { %v920_v61 = vsel %vm74_vm0, %v1698_v23, 0.0 }
 0x5cc   :  { %921 = vadd.xlane.f32.xlu0 %v920_v61 }
 0x5cd   :  { %v1144_v62 = vpop.eup %1143 }
 0x5ce   :  { %v1081_v63 = vadd.f32 -1.0, %v1144_v62 }
 0x5d0   :  { %v909_v0 = vsel %vm889_vm15, %v883_v18, %v1081_v63 }
 0x5d1   :  { %v1705_v1 = vadd.f32 %v1152_v36, %v909_v0 }
 0x5d3   :  { %v923_v2 = vsel %vm74_vm0, %v1705_v1, 0.0 }
 0x5d4   :  { %924 = vadd.xlane.f32.xlu1 %v923_v2 }
 0x62f   :  { %v916_v3 = vpop.xlane.xlu1 %915 }
 0x637   :  { %v919_v11 = vpop.xlane.xlu2 %918 }
 0x63f   :  { %v922_v4 = vpop.xlane.xlu0 %921 }
 0x640   :  { %v926_v5 = vadd.f32 %v922_v4, %v916_v3 }
 0x642   :  { %v928_v6 = vmul.f32 0.015625, %v926_v5 }
 0x644   :  { %v930_v7 = vsub.f32 %v1684_v45, %v928_v6  ;;  %v940_v8 = vsub.f32 %v1698_v23, %v928_v6 }
 0x646   :  { %v932_v9 = vmul.f32 %v930_v7, %v930_v7  ;;  %v942_v10 = vmul.f32 %v940_v8, %v940_v8 }
 0x647   :  { %v925_v13 = vpop.xlane.xlu1 %924 }
 0x648   :  { %v927_v14 = vadd.f32 %v925_v13, %v919_v11  ;;  %v934_v16 = vsel %vm74_vm0, %v932_v9, 0.0  ;;  %v944_v17 = vsel %vm74_vm0, %v942_v10, 0.0 }
 0x649   :  { %935 = vadd.xlane.f32.xlu2 %v934_v16  ;;  %945 = vadd.xlane.f32.xlu1 %v944_v17 }
 0x64a   :  { %v929_v19 = vmul.f32 0.015625, %v927_v14 }
 0x64c   :  { %v941_v20 = vsub.f32 %v1705_v1, %v929_v19  ;;  %v931_v21 = vsub.f32 %v1691_v53, %v929_v19 }
 0x64e   :  { %v943_v22 = vmul.f32 %v941_v20, %v941_v20  ;;  %v933_v24 = vmul.f32 %v931_v21, %v931_v21 }
 0x650   :  { %v947_v25 = vsel %vm74_vm0, %v943_v22, 0.0  ;;  %v937_v26 = vsel %vm74_vm0, %v933_v24, 0.0 }
 0x651   :  { %948 = vadd.xlane.f32.xlu2 %v947_v25  ;;  %938 = vadd.xlane.f32.xlu0 %v937_v26 }
 0x6bc   :  { %v936_v28 = vpop.xlane.xlu2 %935  ;;  %v946_v29 = vpop.xlane.xlu1 %945 }
 0x6bd   :  { %v950_v30 = vadd.f32 %v946_v29, %v936_v28 }
 0x6bf   :  { %v952_v31 = vmul.f32 0.015625, %v950_v30 }
 0x6c1   :  { %v956_v32 = vadd.f32 1e-05, %v952_v31 }
 0x6c3   :  { %1145 = vrsqrt.f32 %v956_v32  ;;  %vm964_vm3 = vweird.f32 %v956_v32 }
 0x6c4   :  { %v949_v33 = vpop.xlane.xlu2 %948  ;;  %v939_v34 = vpop.xlane.xlu0 %938 }
 0x6c5   :  { %v951_v35 = vadd.f32 %v949_v33, %v939_v34 }
 0x6c7   :  { %v953_v37 = vmul.f32 0.015625, %v951_v35 }
 0x6c9   :  { %v1146_v38 = vpop.eup %1145  ;;  %v957_v39 = vadd.f32 1e-05, %v953_v37 }
 0x6ca   :  { %v959_v40 = vmul.f32 %v1146_v38, %v956_v32  ;;  %vm965_vm1 = vweird.f32 %v1146_v38 }
 0x6cb   :  { %1147 = vrsqrt.f32 %v957_v39  ;;  %vm966_vm4 = vmor %vm964_vm3, %vm965_vm1  ;;  %vm974_vm6 = vweird.f32 %v957_v39 }
 0x6cc   :  { %v960_v12 = vmul.f32 %v1146_v38, %v959_v40 }
 0x6ce   :  { %v961_v42 = vmul.f32 0.5, %v960_v12 }
 0x6d0   :  { %v962_v43 = vsub.f32 1.5, %v961_v42 }
 0x6d1   :  { %v1148_v41 = vpop.eup %1147 }
 0x6d2   :  { %v969_v44 = vmul.f32 %v1148_v41, %v957_v39  ;;  %v963_v46 = vmul.f32 %v1146_v38, %v962_v43  ;;  %vm975_vm5 = vweird.f32 %v1148_v41 }
 0x6d3   :  { %vm976_vm7 = vmor %vm974_vm6, %vm975_vm5 }
 0x6d4   :  { %v970_v47 = vmul.f32 %v1148_v41, %v969_v44  ;;  %v967_v48 = vsel %vm966_vm4, %v1146_v38, %v963_v46 }
 0x6d5   :  { %v978_v49 = vmul.f32 %v967_v48, %v954_v15 }
 0x6d6   :  { %v971_v50 = vmul.f32 0.5, %v970_v47 }
 0x6d7   :  { %988 = vperm.xlu0 %1102, %v978_v49   ;;  %v982_v52 = vmul.f32 %v978_v49, %v928_v6 }
 0x6d8   :  { %v972_v18 = vsub.f32 1.5, %v971_v50 }
 0x6d9   :  { %v984_v54 = vsub.f32 %v980_v51, %v982_v52 }
 0x6da   :  { %v973_v56 = vmul.f32 %v1148_v41, %v972_v18 }
 0x6db   :  { %1000 = vperm.xlu2 %1104, %v984_v54  }
 0x6dc   :  { %v977_v57 = vsel %vm976_vm7, %v1148_v41, %v973_v56 }
 0x6dd   :  { %v979_v58 = vmul.f32 %v977_v57, %v955_v55 }
 0x6df   :  { %993 = vperm.xlu1 %1103, %v979_v58   ;;  %v983_v59 = vmul.f32 %v979_v58, %v929_v19 }
 0x6e1   :  { %v985_v61 = vsub.f32 %v981_v60, %v983_v59 }
 0x6e7   :  { %1005 = vperm.xlu1 %1103, %v985_v61  }
 0x735   :  { %v1001_v36 = vpop.permute.xlu2 %1000 }
 0x749   :  { %v989_v62 = vpop.permute.xlu0 %988 }
 0x74a   :  { %v996_v63 = vmul.f32 %v989_v62, %v1684_v45  ;;  %v1014_v0 = vmul.f32 %v989_v62, %v1698_v23 }
 0x74c   :  { %v1008_v2 = vadd.f32 %v1001_v36, %v996_v63  ;;  %v1016_v3 = vadd.f32 %v1014_v0, %v1001_v36 }
 0x74e   :  { %v1010_v4 = vmax.f32 %v1008_v2, 0.0  ;;  %v1018_v5 = vmax.f32 %v1016_v3, 0.0 }
 0x750   :  { %1012 = vst.msk [vmem:[%s1766_s17] sm:$0xff] %vm74_vm0, %v1010_v4 }
 0x751   :  { %1020 = vst.msk [vmem:[%s1766_s17 + $0x10] sm:$0xff] %vm74_vm0, %v1018_v5  ;;  %v994_v6 = vpop.permute.xlu1 %993 }
 0x752   :  { %v997_v45 = vmul.f32 %v994_v6, %v1691_v53  ;;  %v1015_v23 = vmul.f32 %v994_v6, %v1705_v1 }
 0x759   :  { %v1006_v7 = vpop.permute.xlu1 %1005 }
 0x75a   :  { %v1009_v8 = vadd.f32 %v1006_v7, %v997_v45  ;;  %v1017_v9 = vadd.f32 %v1015_v23, %v1006_v7 }
 0x75c   :  { %v1011_v10 = vmax.f32 %v1009_v8, 0.0  ;;  %v1019_v11 = vmax.f32 %v1017_v9, 0.0 }
 0x75e   :  { %1013 = vst.msk [vmem:[%s1766_s17 + $0x8] sm:$0xff] %vm74_vm0, %v1011_v10 }
 0x75f   :  { %1021 = vst.msk [vmem:[%s1766_s17 + $0x18] sm:$0xff] %vm74_vm0, %v1019_v11 }

</bundles_post_ra>
